<compile_context>
chip_gen: v7x
topology: tpu7x:2x2x1
jax: 0.10.0
libtpu: 0.0.40
codegen_flags: <defaults>
</compile_context>

<pallas_src>
import functools
import math

import jax
import jax.numpy as jnp
from jax.experimental import pallas as pl
from jax.experimental.pallas import tpu as pltpu

# ----------------------- model hyper-parameters (args) -----------------------
HIDDEN = 64          # args.hidden_dim
N_LAYERS = 1         # args.n_layers (LSTM layers; BertEncoder always has 1 layer)
N_HEADS = 2          # args.n_heads
N_TEST = 10          # args.n_test
N_QUESTIONS = 20     # args.n_questions
N_TAG = 5            # args.n_tag
LN_EPS = 1e-12       # BertLayerNorm eps


# ------------------------------ in-kernel helpers -----------------------------
def _gelu(x):
    # tanh-GELU approximation (one EUP tanh + a few VPU ops).
    return 0.5 * x * (1.0 + jnp.tanh(0.7978845608028654 * (x + 0.044715 * x * x * x)))


def _layernorm(x, g, b):
    mu = jnp.mean(x, axis=-1, keepdims=True)
    var = jnp.mean(jnp.square(x - mu), axis=-1, keepdims=True)
    return (x - mu) * jax.lax.rsqrt(var + LN_EPS) * g + b


# ------------------------- fully fused forward kernel --------------------------
def _fused_kernel(x_ref, mask_ref, w_ref, v_ref, o_ref, hseq_ref, *,
                  n_heads, n_layers):
    # Single invocation (no grid): all activations + packed params sit in VMEM.
    B, S = o_ref.shape
    H = x_ref.shape[-1]
    H3, H4, H8 = 3 * H, 4 * H, 8 * H
    dh = H // n_heads
    scale = 1.0 / math.sqrt(dh)

    # ------------------------ LSTM stack (zero initial h, c) -------------------
    cur = x_ref[...]                                                     # (B, S, H)
    for layer in range(n_layers):
        w_ih = w_ref[:, layer * H8: layer * H8 + H4]                     # (H, 4H)
        w_hh = w_ref[:, layer * H8 + H4: (layer + 1) * H8]               # (H, 4H)
        b_l = v_ref[layer: layer + 1, :]                                 # (1, 4H) gates i,f,o,g
        # Hoisted input projection: one (B*S, H) @ (H, 4H) matmul for all steps.
        gates_x = (jnp.dot(cur.reshape(B * S, H), w_ih,
                           preferred_element_type=jnp.float32) + b_l
                   ).reshape(B, S, H4)
        h = jnp.zeros((B, H), jnp.float32)
        c = jnp.zeros((B, H), jnp.float32)
        # Fully-unrolled time loop (S static & small); only h @ W_hh recurs.
        for t in range(S):
            g = gates_x[:, t, :] + jnp.dot(h, w_hh,
                                           preferred_element_type=jnp.float32)
            sfo = jax.nn.sigmoid(g[:, 0:H3])          # i | f | o, one wide sigmoid
            gg = jnp.tanh(g[:, H3:H4])                # cell candidate
            c = sfo[:, H:2 * H] * c + sfo[:, 0:H] * gg
            h = sfo[:, 2 * H:H3] * jnp.tanh(c)
            hseq_ref[:, t, :] = h                     # VMEM scratch, never HBM
        cur = hseq_ref[...]

    # -------------------- packed BERT-layer parameter slices -------------------
    boff = n_layers * H8
    wqkv = w_ref[:, boff: boff + H3]
    wo = w_ref[:, boff + H3: boff + 4 * H]
    wi = w_ref[:, boff + 4 * H: boff + 5 * H]
    w2 = w_ref[:, boff + 5 * H: boff + 6 * H]
    r = n_layers
    bqkv = v_ref[r: r + 1, 0:H3]
    bo = v_ref[r + 1: r + 2, 0:H]
    ln1_g = v_ref[r + 1: r + 2, H:2 * H]
    ln1_b = v_ref[r + 1: r + 2, 2 * H:H3]
    bi = v_ref[r + 1: r + 2, H3:H4]
    b2 = v_ref[r + 2: r + 3, 0:H]
    ln2_g = v_ref[r + 2: r + 3, H:2 * H]
    ln2_b = v_ref[r + 2: r + 3, 2 * H:H3]
    fcw = v_ref[r + 2: r + 3, H3:H4]                                     # (1, H)
    fc_b = v_ref[r + 3: r + 4, 0:1]                                      # (1, 1)

    # ------------------------------ self-attention -----------------------------
    h2 = cur.reshape(B * S, H)
    qkv = jnp.dot(h2, wqkv, preferred_element_type=jnp.float32) + bqkv   # (BS, 3H)
    q = qkv[:, 0:H].reshape(B, S, H)
    k = qkv[:, H:2 * H].reshape(B, S, H)
    vv = qkv[:, 2 * H:H3].reshape(B, S, H)

    # extended attention mask: (1 - mask) * -10000, broadcast over heads/queries.
    add_mask = (1.0 - mask_ref[...])[:, None, :] * (-10000.0)            # (B, 1, S)

    ctx_heads = []
    for hh in range(n_heads):                         # n_heads=2, static unroll
        sl = slice(hh * dh, (hh + 1) * dh)
        scores = jnp.einsum('bqd,bkd->bqk', q[:, :, sl], k[:, :, sl],
                            preferred_element_type=jnp.float32) * scale + add_mask
        m = jnp.max(scores, axis=-1, keepdims=True)
        e = jnp.exp(scores - m)
        p = e * pl.reciprocal(jnp.sum(e, axis=-1, keepdims=True), approx=True)
        ctx_heads.append(jnp.einsum('bqk,bkd->bqd', p, vv[:, :, sl],
                                    preferred_element_type=jnp.float32))
    ctx = jnp.concatenate(ctx_heads, axis=-1).reshape(B * S, H)

    # BertSelfOutput: dense + residual + LayerNorm (dropout = identity).
    attn_out = _layernorm(
        jnp.dot(ctx, wo, preferred_element_type=jnp.float32) + bo + h2,
        ln1_g, ln1_b)

    # BertIntermediate (GELU) + BertOutput: dense + residual + LayerNorm.
    inter = _gelu(jnp.dot(attn_out, wi, preferred_element_type=jnp.float32) + bi)
    layer_out = _layernorm(
        jnp.dot(inter, w2, preferred_element_type=jnp.float32) + b2 + attn_out,
        ln2_g, ln2_b)

    # fc (H -> 1) as a lane reduction + sigmoid, written as a (B, S) block.
    logits = jnp.sum(layer_out.reshape(B, S, H) * fcw.reshape(1, 1, H),
                     axis=-1) + fc_b
    o_ref[...] = jax.nn.sigmoid(logits).astype(o_ref.dtype)


def fused_forward(x, mask_f, w_all, vecs):
    B, S, H = x.shape
    return pl.pallas_call(
        functools.partial(_fused_kernel, n_heads=N_HEADS, n_layers=N_LAYERS),
        out_shape=jax.ShapeDtypeStruct((B, S), x.dtype),
        scratch_shapes=[pltpu.VMEM((B, S, H), jnp.float32)],
    )(x, mask_f, w_all, vecs)


# --------------------------- parameters (deterministic) ------------------------
def init_params(key):
    hd = HIDDEN
    ed = hd // 3
    keys = iter(jax.random.split(key, 64))

    def nrm(shape, scale=0.02):
        return (scale * jax.random.normal(next(keys), shape)).astype(jnp.float32)

    p = {
        "emb_interaction": nrm((3, ed)),
        "emb_test": nrm((N_TEST + 1, ed)),
        "emb_question": nrm((N_QUESTIONS + 1, ed)),
        "emb_tag": nrm((N_TAG + 1, ed)),
        "comb_w": nrm((ed * 4, hd)), "comb_b": nrm((1, hd)),
        # BERT layer (1 hidden layer, intermediate_size == hidden_dim)
        "wq": nrm((hd, hd)), "bq": nrm((1, hd)),
        "wk": nrm((hd, hd)), "bk": nrm((1, hd)),
        "wv": nrm((hd, hd)), "bv": nrm((1, hd)),
        "wo": nrm((hd, hd)), "bo": nrm((1, hd)),
        "ln1_g": jnp.ones((1, hd), jnp.float32), "ln1_b": jnp.zeros((1, hd), jnp.float32),
        "wi": nrm((hd, hd)), "bi": nrm((1, hd)),
        "w2": nrm((hd, hd)), "b2": nrm((1, hd)),
        "ln2_g": jnp.ones((1, hd), jnp.float32), "ln2_b": jnp.zeros((1, hd), jnp.float32),
        "fc_w": nrm((hd, 1)), "fc_b": nrm((1, 1)),
    }
    # LSTM layers (PyTorch layout: gate columns i,f,g,o; b_ih + b_hh folded)
    p["lstm"] = []
    for _ in range(N_LAYERS):
        p["lstm"].append(dict(
            w_ih_t=nrm((hd, 4 * hd)),
            w_hh_t=nrm((hd, 4 * hd)),
            bias=nrm((1, 4 * hd)),
        ))
    return p


def prepare_params(params):
    """One-time (outside jit) parameter folding & packing."""
    hd = HIDDEN
    ed = hd // 3
    assert len(params["lstm"]) == N_LAYERS and N_LAYERS + 4 <= 8

    def _reorder(m):
        # PyTorch LSTM gate columns (i, f, g, o) -> kernel order (i, f, o, g).
        return jnp.concatenate(
            [m[..., 0:hd], m[..., hd:2 * hd], m[..., 3 * hd:4 * hd], m[..., 2 * hd:3 * hd]],
            axis=-1)

    # Fold comb_proj into the embedding tables (concat+linear == sum of per-table
    # projections); fold comb_b into the interaction table.
    cw = params["comb_w"]
    t_i = jnp.dot(params["emb_interaction"], cw[0:ed]) + params["comb_b"]
    t_t = jnp.dot(params["emb_test"], cw[ed:2 * ed])
    t_q = jnp.dot(params["emb_question"], cw[2 * ed:3 * ed])
    t_g = jnp.dot(params["emb_tag"], cw[3 * ed:4 * ed])

    # Packed weight slab: [per-layer (w_ih_t|w_hh_t)] | wq|wk|wv | wo | wi | w2.
    lstm_blocks = [jnp.concatenate([_reorder(lp["w_ih_t"]), _reorder(lp["w_hh_t"])], axis=1)
                   for lp in params["lstm"]]
    wqkv = jnp.concatenate([params["wq"], params["wk"], params["wv"]], axis=1)
    w_all = jnp.concatenate(
        lstm_blocks + [wqkv, params["wo"], params["wi"], params["w2"]], axis=1)

    # Packed bias / LayerNorm / fc slab: one (rows, 4H) f32 array.
    def _row(*parts):
        r = jnp.concatenate(parts, axis=1) if len(parts) > 1 else parts[0]
        pad = 4 * hd - r.shape[1]
        if pad:
            r = jnp.concatenate([r, jnp.zeros((1, pad), jnp.float32)], axis=1)
        return r

    bqkv = jnp.concatenate([params["bq"], params["bk"], params["bv"]], axis=1)
    rows = [_row(_reorder(lp["bias"])) for lp in params["lstm"]]
    rows += [
        _row(bqkv),
        _row(params["bo"], params["ln1_g"], params["ln1_b"], params["bi"]),
        _row(params["b2"], params["ln2_g"], params["ln2_b"], params["fc_w"].T),
        _row(params["fc_b"]),
    ]
    pad_rows = (-len(rows)) % 8
    if pad_rows:
        rows.append(jnp.zeros((pad_rows, 4 * hd), jnp.float32))
    vecs = jnp.concatenate(rows, axis=0)

    return {"t_i": t_i, "t_t": t_t, "t_q": t_q, "t_g": t_g,
            "w_all": w_all, "vecs": vecs}


# --------------------------------- forward -------------------------------------
def lstmattn_forward(prep, test, question, tag, mask, interaction):
    # Embedding gathers (data-dependent, tiny) stay in plain JAX; comb_proj and
    # its bias are already folded into the tables.
    # TODO(synk): embedding gathers could be pulled in-kernel via scalar prefetch.
    X = (jnp.take(prep["t_i"], interaction, axis=0)
         + jnp.take(prep["t_t"], test, axis=0)
         + jnp.take(prep["t_q"], question, axis=0)
         + jnp.take(prep["t_g"], tag, axis=0))                          # (B, S, H)

    # One fused kernel: LSTM + BertLayer + fc + sigmoid.
    return fused_forward(X, mask.astype(jnp.float32),
                         prep["w_all"], prep["vecs"])                   # (B, S)


# ----------------------------------- main --------------------------------------
if __name__ == "__main__":
    B, S = 2, 8
    key = jax.random.PRNGKey(0)
    kp, k1, k2, k3, k4 = jax.random.split(key, 5)

    params = init_params(kp)
    prep = prepare_params(params)          # one-time fold/pack, outside jit

    test = jax.random.randint(k1, (B, S), 1, N_TEST + 1, dtype=jnp.int32)
    question = jax.random.randint(k2, (B, S), 1, N_QUESTIONS + 1, dtype=jnp.int32)
    tag = jax.random.randint(k3, (B, S), 1, N_TAG + 1, dtype=jnp.int32)
    interaction = jax.random.randint(k4, (B, S), 0, 3, dtype=jnp.int32)
    lens = jnp.array([S, 5], dtype=jnp.int32)
    mask = (jnp.arange(S)[None, :] < lens[:, None]).astype(jnp.int32)    # (B, S)

    fwd = jax.jit(lstmattn_forward)
    preds = fwd(prep, test, question, tag, mask, interaction)
    jax.block_until_ready(preds)
    assert preds.shape == (B, S) and preds.dtype == jnp.float32
    assert bool(jnp.all(jnp.isfinite(preds)))
    print("KERNEL_OK")
</pallas_src>

<mosaic_0001>
module attributes {stable_mosaic.version = 11 : i64} {
  func.func @_fused_kernel(%arg0: memref<2x8x64xf32, #tpu.memory_space<vmem>>, %arg1: memref<2x8xf32, #tpu.memory_space<vmem>>, %arg2: memref<64x896xf32, #tpu.memory_space<vmem>>, %arg3: memref<8x256xf32, #tpu.memory_space<vmem>>, %arg4: memref<2x8xf32, #tpu.memory_space<vmem>>, %arg5: memref<2x8x64xf32, #tpu.memory_space<vmem>>) attributes {dimension_semantics = [], scalar_prefetch = 0 : i64, scratch_operands = 1 : i64, tpu.core_type = #tpu.core_type<tc>} {
    %c0 = arith.constant 0 : index
    %c0_0 = arith.constant 0 : index
    %c0_1 = arith.constant 0 : index
    %0 = vector.load %arg0[%c0, %c0_0, %c0_1] : memref<2x8x64xf32, #tpu.memory_space<vmem>>, vector<2x8x64xf32>
    %c0_2 = arith.constant 0 : index
    %c0_3 = arith.constant 0 : index
    %1 = vector.load %arg2[%c0_2, %c0_3] : memref<64x896xf32, #tpu.memory_space<vmem>>, vector<64x256xf32>
    %c0_4 = arith.constant 0 : index
    %c256 = arith.constant 256 : index
    %2 = vector.load %arg2[%c0_4, %c256] : memref<64x896xf32, #tpu.memory_space<vmem>>, vector<64x256xf32>
    %c0_5 = arith.constant 0 : index
    %c0_6 = arith.constant 0 : index
    %3 = vector.load %arg3[%c0_5, %c0_6] : memref<8x256xf32, #tpu.memory_space<vmem>>, vector<1x256xf32>
    %4 = vector.shape_cast %0 : vector<2x8x64xf32> to vector<16x64xf32>
    %cst = arith.constant dense<0.000000e+00> : vector<16x256xf32>
    %5 = tpu.matmul %4, %1, %cst {dimension_numbers = #tpu.dot_dimension_numbers<[1], [0], [0], [1], [0, 0, 1, 1], [], []>} : vector<16x64xf32>, vector<64x256xf32>, vector<16x256xf32> -> vector<16x256xf32>
    %6 = vector.broadcast %3 : vector<1x256xf32> to vector<16x256xf32>
    %7 = arith.addf %5, %6 : vector<16x256xf32>
    %8 = vector.shape_cast %7 : vector<16x256xf32> to vector<2x8x256xf32>
    %cst_7 = arith.constant 0.000000e+00 : f32
    %9 = vector.broadcast %cst_7 : f32 to vector<2x64xf32>
    %cst_8 = arith.constant 0.000000e+00 : f32
    %10 = vector.broadcast %cst_8 : f32 to vector<2x64xf32>
    %11 = vector.extract_strided_slice %8 {offsets = [0, 0, 0], sizes = [2, 1, 256], strides = [1, 1, 1]} : vector<2x8x256xf32> to vector<2x1x256xf32>
    %12 = vector.shape_cast %11 : vector<2x1x256xf32> to vector<2x256xf32>
    %cst_9 = arith.constant dense<0.000000e+00> : vector<2x256xf32>
    %13 = tpu.matmul %9, %2, %cst_9 {dimension_numbers = #tpu.dot_dimension_numbers<[1], [0], [0], [1], [0, 0, 1, 1], [], []>} : vector<2x64xf32>, vector<64x256xf32>, vector<2x256xf32> -> vector<2x256xf32>
    %14 = arith.addf %12, %13 : vector<2x256xf32>
    %15 = vector.extract_strided_slice %14 {offsets = [0, 0], sizes = [2, 192], strides = [1, 1]} : vector<2x256xf32> to vector<2x192xf32>
    %16 = arith.negf %15 : vector<2x192xf32>
    %17 = math.exp %16 : vector<2x192xf32>
    %cst_10 = arith.constant 1.000000e+00 : f32
    %18 = vector.broadcast %cst_10 : f32 to vector<2x192xf32>
    %19 = arith.addf %18, %17 : vector<2x192xf32>
    %20 = arith.divf %18, %19 : vector<2x192xf32>
    %21 = vector.extract_strided_slice %14 {offsets = [0, 192], sizes = [2, 64], strides = [1, 1]} : vector<2x256xf32> to vector<2x64xf32>
    %22 = math.tanh %21 : vector<2x64xf32>
    %23 = vector.extract_strided_slice %20 {offsets = [0, 64], sizes = [2, 64], strides = [1, 1]} : vector<2x192xf32> to vector<2x64xf32>
    %24 = arith.mulf %23, %10 : vector<2x64xf32>
    %25 = vector.extract_strided_slice %20 {offsets = [0, 0], sizes = [2, 64], strides = [1, 1]} : vector<2x192xf32> to vector<2x64xf32>
    %26 = arith.mulf %25, %22 : vector<2x64xf32>
    %27 = arith.addf %24, %26 : vector<2x64xf32>
    %28 = vector.extract_strided_slice %20 {offsets = [0, 128], sizes = [2, 64], strides = [1, 1]} : vector<2x192xf32> to vector<2x64xf32>
    %29 = math.tanh %27 : vector<2x64xf32>
    %30 = arith.mulf %28, %29 : vector<2x64xf32>
    %c0_11 = arith.constant 0 : index
    %c0_12 = arith.constant 0 : index
    %c0_13 = arith.constant 0 : index
    %31 = vector.load %arg5[%c0_11, %c0_12, %c0_13] : memref<2x8x64xf32, #tpu.memory_space<vmem>>, vector<2x1x64xf32>
    %32 = vector.shape_cast %31 : vector<2x1x64xf32> to vector<2x64xf32>
    %33 = vector.shape_cast %30 : vector<2x64xf32> to vector<2x1x64xf32>
    tpu.vector_store %arg5[%c0_11, %c0_12, %c0_13], %33 {strides = array<i32>} : memref<2x8x64xf32, #tpu.memory_space<vmem>>, vector<2x1x64xf32>,
    %34 = vector.extract_strided_slice %8 {offsets = [0, 1, 0], sizes = [2, 1, 256], strides = [1, 1, 1]} : vector<2x8x256xf32> to vector<2x1x256xf32>
    %35 = vector.shape_cast %34 : vector<2x1x256xf32> to vector<2x256xf32>
    %cst_14 = arith.constant dense<0.000000e+00> : vector<2x256xf32>
    %36 = tpu.matmul %30, %2, %cst_14 {dimension_numbers = #tpu.dot_dimension_numbers<[1], [0], [0], [1], [0, 0, 1, 1], [], []>} : vector<2x64xf32>, vector<64x256xf32>, vector<2x256xf32> -> vector<2x256xf32>
    %37 = arith.addf %35, %36 : vector<2x256xf32>
    %38 = vector.extract_strided_slice %37 {offsets = [0, 0], sizes = [2, 192], strides = [1, 1]} : vector<2x256xf32> to vector<2x192xf32>
    %39 = arith.negf %38 : vector<2x192xf32>
    %40 = math.exp %39 : vector<2x192xf32>
    %cst_15 = arith.constant 1.000000e+00 : f32
    %41 = vector.broadcast %cst_15 : f32 to vector<2x192xf32>
    %42 = arith.addf %41, %40 : vector<2x192xf32>
    %43 = arith.divf %41, %42 : vector<2x192xf32>
    %44 = vector.extract_strided_slice %37 {offsets = [0, 192], sizes = [2, 64], strides = [1, 1]} : vector<2x256xf32> to vector<2x64xf32>
    %45 = math.tanh %44 : vector<2x64xf32>
    %46 = vector.extract_strided_slice %43 {offsets = [0, 64], sizes = [2, 64], strides = [1, 1]} : vector<2x192xf32> to vector<2x64xf32>
    %47 = arith.mulf %46, %27 : vector<2x64xf32>
    %48 = vector.extract_strided_slice %43 {offsets = [0, 0], sizes = [2, 64], strides = [1, 1]} : vector<2x192xf32> to vector<2x64xf32>
    %49 = arith.mulf %48, %45 : vector<2x64xf32>
    %50 = arith.addf %47, %49 : vector<2x64xf32>
    %51 = vector.extract_strided_slice %43 {offsets = [0, 128], sizes = [2, 64], strides = [1, 1]} : vector<2x192xf32> to vector<2x64xf32>
    %52 = math.tanh %50 : vector<2x64xf32>
    %53 = arith.mulf %51, %52 : vector<2x64xf32>
    %c0_16 = arith.constant 0 : index
    %c1 = arith.constant 1 : index
    %c0_17 = arith.constant 0 : index
    %54 = vector.load %arg5[%c0_16, %c1, %c0_17] : memref<2x8x64xf32, #tpu.memory_space<vmem>>, vector<2x1x64xf32>
    %55 = vector.shape_cast %54 : vector<2x1x64xf32> to vector<2x64xf32>
    %56 = vector.shape_cast %53 : vector<2x64xf32> to vector<2x1x64xf32>
    tpu.vector_store %arg5[%c0_16, %c1, %c0_17], %56 {strides = array<i32>} : memref<2x8x64xf32, #tpu.memory_space<vmem>>, vector<2x1x64xf32>,
    %57 = vector.extract_strided_slice %8 {offsets = [0, 2, 0], sizes = [2, 1, 256], strides = [1, 1, 1]} : vector<2x8x256xf32> to vector<2x1x256xf32>
    %58 = vector.shape_cast %57 : vector<2x1x256xf32> to vector<2x256xf32>
    %cst_18 = arith.constant dense<0.000000e+00> : vector<2x256xf32>
    %59 = tpu.matmul %53, %2, %cst_18 {dimension_numbers = #tpu.dot_dimension_numbers<[1], [0], [0], [1], [0, 0, 1, 1], [], []>} : vector<2x64xf32>, vector<64x256xf32>, vector<2x256xf32> -> vector<2x256xf32>
    %60 = arith.addf %58, %59 : vector<2x256xf32>
    %61 = vector.extract_strided_slice %60 {offsets = [0, 0], sizes = [2, 192], strides = [1, 1]} : vector<2x256xf32> to vector<2x192xf32>
    %62 = arith.negf %61 : vector<2x192xf32>
    %63 = math.exp %62 : vector<2x192xf32>
    %cst_19 = arith.constant 1.000000e+00 : f32
    %64 = vector.broadcast %cst_19 : f32 to vector<2x192xf32>
    %65 = arith.addf %64, %63 : vector<2x192xf32>
    %66 = arith.divf %64, %65 : vector<2x192xf32>
    %67 = vector.extract_strided_slice %60 {offsets = [0, 192], sizes = [2, 64], strides = [1, 1]} : vector<2x256xf32> to vector<2x64xf32>
    %68 = math.tanh %67 : vector<2x64xf32>
    %69 = vector.extract_strided_slice %66 {offsets = [0, 64], sizes = [2, 64], strides = [1, 1]} : vector<2x192xf32> to vector<2x64xf32>
    %70 = arith.mulf %69, %50 : vector<2x64xf32>
    %71 = vector.extract_strided_slice %66 {offsets = [0, 0], sizes = [2, 64], strides = [1, 1]} : vector<2x192xf32> to vector<2x64xf32>
    %72 = arith.mulf %71, %68 : vector<2x64xf32>
    %73 = arith.addf %70, %72 : vector<2x64xf32>
    %74 = vector.extract_strided_slice %66 {offsets = [0, 128], sizes = [2, 64], strides = [1, 1]} : vector<2x192xf32> to vector<2x64xf32>
    %75 = math.tanh %73 : vector<2x64xf32>
    %76 = arith.mulf %74, %75 : vector<2x64xf32>
    %c0_20 = arith.constant 0 : index
    %c2 = arith.constant 2 : index
    %c0_21 = arith.constant 0 : index
    %77 = vector.load %arg5[%c0_20, %c2, %c0_21] : memref<2x8x64xf32, #tpu.memory_space<vmem>>, vector<2x1x64xf32>
    %78 = vector.shape_cast %77 : vector<2x1x64xf32> to vector<2x64xf32>
    %79 = vector.shape_cast %76 : vector<2x64xf32> to vector<2x1x64xf32>
    tpu.vector_store %arg5[%c0_20, %c2, %c0_21], %79 {strides = array<i32>} : memref<2x8x64xf32, #tpu.memory_space<vmem>>, vector<2x1x64xf32>,
    %80 = vector.extract_strided_slice %8 {offsets = [0, 3, 0], sizes = [2, 1, 256], strides = [1, 1, 1]} : vector<2x8x256xf32> to vector<2x1x256xf32>
    %81 = vector.shape_cast %80 : vector<2x1x256xf32> to vector<2x256xf32>
    %cst_22 = arith.constant dense<0.000000e+00> : vector<2x256xf32>
    %82 = tpu.matmul %76, %2, %cst_22 {dimension_numbers = #tpu.dot_dimension_numbers<[1], [0], [0], [1], [0, 0, 1, 1], [], []>} : vector<2x64xf32>, vector<64x256xf32>, vector<2x256xf32> -> vector<2x256xf32>
    %83 = arith.addf %81, %82 : vector<2x256xf32>
    %84 = vector.extract_strided_slice %83 {offsets = [0, 0], sizes = [2, 192], strides = [1, 1]} : vector<2x256xf32> to vector<2x192xf32>
    %85 = arith.negf %84 : vector<2x192xf32>
    %86 = math.exp %85 : vector<2x192xf32>
    %cst_23 = arith.constant 1.000000e+00 : f32
    %87 = vector.broadcast %cst_23 : f32 to vector<2x192xf32>
    %88 = arith.addf %87, %86 : vector<2x192xf32>
    %89 = arith.divf %87, %88 : vector<2x192xf32>
    %90 = vector.extract_strided_slice %83 {offsets = [0, 192], sizes = [2, 64], strides = [1, 1]} : vector<2x256xf32> to vector<2x64xf32>
    %91 = math.tanh %90 : vector<2x64xf32>
    %92 = vector.extract_strided_slice %89 {offsets = [0, 64], sizes = [2, 64], strides = [1, 1]} : vector<2x192xf32> to vector<2x64xf32>
    %93 = arith.mulf %92, %73 : vector<2x64xf32>
    %94 = vector.extract_strided_slice %89 {offsets = [0, 0], sizes = [2, 64], strides = [1, 1]} : vector<2x192xf32> to vector<2x64xf32>
    %95 = arith.mulf %94, %91 : vector<2x64xf32>
    %96 = arith.addf %93, %95 : vector<2x64xf32>
    %97 = vector.extract_strided_slice %89 {offsets = [0, 128], sizes = [2, 64], strides = [1, 1]} : vector<2x192xf32> to vector<2x64xf32>
    %98 = math.tanh %96 : vector<2x64xf32>
    %99 = arith.mulf %97, %98 : vector<2x64xf32>
    %c0_24 = arith.constant 0 : index
    %c3 = arith.constant 3 : index
    %c0_25 = arith.constant 0 : index
    %100 = vector.load %arg5[%c0_24, %c3, %c0_25] : memref<2x8x64xf32, #tpu.memory_space<vmem>>, vector<2x1x64xf32>
    %101 = vector.shape_cast %100 : vector<2x1x64xf32> to vector<2x64xf32>
    %102 = vector.shape_cast %99 : vector<2x64xf32> to vector<2x1x64xf32>
    tpu.vector_store %arg5[%c0_24, %c3, %c0_25], %102 {strides = array<i32>} : memref<2x8x64xf32, #tpu.memory_space<vmem>>, vector<2x1x64xf32>,
    %103 = vector.extract_strided_slice %8 {offsets = [0, 4, 0], sizes = [2, 1, 256], strides = [1, 1, 1]} : vector<2x8x256xf32> to vector<2x1x256xf32>
    %104 = vector.shape_cast %103 : vector<2x1x256xf32> to vector<2x256xf32>
    %cst_26 = arith.constant dense<0.000000e+00> : vector<2x256xf32>
    %105 = tpu.matmul %99, %2, %cst_26 {dimension_numbers = #tpu.dot_dimension_numbers<[1], [0], [0], [1], [0, 0, 1, 1], [], []>} : vector<2x64xf32>, vector<64x256xf32>, vector<2x256xf32> -> vector<2x256xf32>
    %106 = arith.addf %104, %105 : vector<2x256xf32>
    %107 = vector.extract_strided_slice %106 {offsets = [0, 0], sizes = [2, 192], strides = [1, 1]} : vector<2x256xf32> to vector<2x192xf32>
    %108 = arith.negf %107 : vector<2x192xf32>
    %109 = math.exp %108 : vector<2x192xf32>
    %cst_27 = arith.constant 1.000000e+00 : f32
    %110 = vector.broadcast %cst_27 : f32 to vector<2x192xf32>
    %111 = arith.addf %110, %109 : vector<2x192xf32>
    %112 = arith.divf %110, %111 : vector<2x192xf32>
    %113 = vector.extract_strided_slice %106 {offsets = [0, 192], sizes = [2, 64], strides = [1, 1]} : vector<2x256xf32> to vector<2x64xf32>
    %114 = math.tanh %113 : vector<2x64xf32>
    %115 = vector.extract_strided_slice %112 {offsets = [0, 64], sizes = [2, 64], strides = [1, 1]} : vector<2x192xf32> to vector<2x64xf32>
    %116 = arith.mulf %115, %96 : vector<2x64xf32>
    %117 = vector.extract_strided_slice %112 {offsets = [0, 0], sizes = [2, 64], strides = [1, 1]} : vector<2x192xf32> to vector<2x64xf32>
    %118 = arith.mulf %117, %114 : vector<2x64xf32>
    %119 = arith.addf %116, %118 : vector<2x64xf32>
    %120 = vector.extract_strided_slice %112 {offsets = [0, 128], sizes = [2, 64], strides = [1, 1]} : vector<2x192xf32> to vector<2x64xf32>
    %121 = math.tanh %119 : vector<2x64xf32>
    %122 = arith.mulf %120, %121 : vector<2x64xf32>
    %c0_28 = arith.constant 0 : index
    %c4 = arith.constant 4 : index
    %c0_29 = arith.constant 0 : index
    %123 = vector.load %arg5[%c0_28, %c4, %c0_29] : memref<2x8x64xf32, #tpu.memory_space<vmem>>, vector<2x1x64xf32>
    %124 = vector.shape_cast %123 : vector<2x1x64xf32> to vector<2x64xf32>
    %125 = vector.shape_cast %122 : vector<2x64xf32> to vector<2x1x64xf32>
    tpu.vector_store %arg5[%c0_28, %c4, %c0_29], %125 {strides = array<i32>} : memref<2x8x64xf32, #tpu.memory_space<vmem>>, vector<2x1x64xf32>,
    %126 = vector.extract_strided_slice %8 {offsets = [0, 5, 0], sizes = [2, 1, 256], strides = [1, 1, 1]} : vector<2x8x256xf32> to vector<2x1x256xf32>
    %127 = vector.shape_cast %126 : vector<2x1x256xf32> to vector<2x256xf32>
    %cst_30 = arith.constant dense<0.000000e+00> : vector<2x256xf32>
    %128 = tpu.matmul %122, %2, %cst_30 {dimension_numbers = #tpu.dot_dimension_numbers<[1], [0], [0], [1], [0, 0, 1, 1], [], []>} : vector<2x64xf32>, vector<64x256xf32>, vector<2x256xf32> -> vector<2x256xf32>
    %129 = arith.addf %127, %128 : vector<2x256xf32>
    %130 = vector.extract_strided_slice %129 {offsets = [0, 0], sizes = [2, 192], strides = [1, 1]} : vector<2x256xf32> to vector<2x192xf32>
    %131 = arith.negf %130 : vector<2x192xf32>
    %132 = math.exp %131 : vector<2x192xf32>
    %cst_31 = arith.constant 1.000000e+00 : f32
    %133 = vector.broadcast %cst_31 : f32 to vector<2x192xf32>
    %134 = arith.addf %133, %132 : vector<2x192xf32>
    %135 = arith.divf %133, %134 : vector<2x192xf32>
    %136 = vector.extract_strided_slice %129 {offsets = [0, 192], sizes = [2, 64], strides = [1, 1]} : vector<2x256xf32> to vector<2x64xf32>
    %137 = math.tanh %136 : vector<2x64xf32>
    %138 = vector.extract_strided_slice %135 {offsets = [0, 64], sizes = [2, 64], strides = [1, 1]} : vector<2x192xf32> to vector<2x64xf32>
    %139 = arith.mulf %138, %119 : vector<2x64xf32>
    %140 = vector.extract_strided_slice %135 {offsets = [0, 0], sizes = [2, 64], strides = [1, 1]} : vector<2x192xf32> to vector<2x64xf32>
    %141 = arith.mulf %140, %137 : vector<2x64xf32>
    %142 = arith.addf %139, %141 : vector<2x64xf32>
    %143 = vector.extract_strided_slice %135 {offsets = [0, 128], sizes = [2, 64], strides = [1, 1]} : vector<2x192xf32> to vector<2x64xf32>
    %144 = math.tanh %142 : vector<2x64xf32>
    %145 = arith.mulf %143, %144 : vector<2x64xf32>
    %c0_32 = arith.constant 0 : index
    %c5 = arith.constant 5 : index
    %c0_33 = arith.constant 0 : index
    %146 = vector.load %arg5[%c0_32, %c5, %c0_33] : memref<2x8x64xf32, #tpu.memory_space<vmem>>, vector<2x1x64xf32>
    %147 = vector.shape_cast %146 : vector<2x1x64xf32> to vector<2x64xf32>
    %148 = vector.shape_cast %145 : vector<2x64xf32> to vector<2x1x64xf32>
    tpu.vector_store %arg5[%c0_32, %c5, %c0_33], %148 {strides = array<i32>} : memref<2x8x64xf32, #tpu.memory_space<vmem>>, vector<2x1x64xf32>,
    %149 = vector.extract_strided_slice %8 {offsets = [0, 6, 0], sizes = [2, 1, 256], strides = [1, 1, 1]} : vector<2x8x256xf32> to vector<2x1x256xf32>
    %150 = vector.shape_cast %149 : vector<2x1x256xf32> to vector<2x256xf32>
    %cst_34 = arith.constant dense<0.000000e+00> : vector<2x256xf32>
    %151 = tpu.matmul %145, %2, %cst_34 {dimension_numbers = #tpu.dot_dimension_numbers<[1], [0], [0], [1], [0, 0, 1, 1], [], []>} : vector<2x64xf32>, vector<64x256xf32>, vector<2x256xf32> -> vector<2x256xf32>
    %152 = arith.addf %150, %151 : vector<2x256xf32>
    %153 = vector.extract_strided_slice %152 {offsets = [0, 0], sizes = [2, 192], strides = [1, 1]} : vector<2x256xf32> to vector<2x192xf32>
    %154 = arith.negf %153 : vector<2x192xf32>
    %155 = math.exp %154 : vector<2x192xf32>
    %cst_35 = arith.constant 1.000000e+00 : f32
    %156 = vector.broadcast %cst_35 : f32 to vector<2x192xf32>
    %157 = arith.addf %156, %155 : vector<2x192xf32>
    %158 = arith.divf %156, %157 : vector<2x192xf32>
    %159 = vector.extract_strided_slice %152 {offsets = [0, 192], sizes = [2, 64], strides = [1, 1]} : vector<2x256xf32> to vector<2x64xf32>
    %160 = math.tanh %159 : vector<2x64xf32>
    %161 = vector.extract_strided_slice %158 {offsets = [0, 64], sizes = [2, 64], strides = [1, 1]} : vector<2x192xf32> to vector<2x64xf32>
    %162 = arith.mulf %161, %142 : vector<2x64xf32>
    %163 = vector.extract_strided_slice %158 {offsets = [0, 0], sizes = [2, 64], strides = [1, 1]} : vector<2x192xf32> to vector<2x64xf32>
    %164 = arith.mulf %163, %160 : vector<2x64xf32>
    %165 = arith.addf %162, %164 : vector<2x64xf32>
    %166 = vector.extract_strided_slice %158 {offsets = [0, 128], sizes = [2, 64], strides = [1, 1]} : vector<2x192xf32> to vector<2x64xf32>
    %167 = math.tanh %165 : vector<2x64xf32>
    %168 = arith.mulf %166, %167 : vector<2x64xf32>
    %c0_36 = arith.constant 0 : index
    %c6 = arith.constant 6 : index
    %c0_37 = arith.constant 0 : index
    %169 = vector.load %arg5[%c0_36, %c6, %c0_37] : memref<2x8x64xf32, #tpu.memory_space<vmem>>, vector<2x1x64xf32>
    %170 = vector.shape_cast %169 : vector<2x1x64xf32> to vector<2x64xf32>
    %171 = vector.shape_cast %168 : vector<2x64xf32> to vector<2x1x64xf32>
    tpu.vector_store %arg5[%c0_36, %c6, %c0_37], %171 {strides = array<i32>} : memref<2x8x64xf32, #tpu.memory_space<vmem>>, vector<2x1x64xf32>,
    %172 = vector.extract_strided_slice %8 {offsets = [0, 7, 0], sizes = [2, 1, 256], strides = [1, 1, 1]} : vector<2x8x256xf32> to vector<2x1x256xf32>
    %173 = vector.shape_cast %172 : vector<2x1x256xf32> to vector<2x256xf32>
    %cst_38 = arith.constant dense<0.000000e+00> : vector<2x256xf32>
    %174 = tpu.matmul %168, %2, %cst_38 {dimension_numbers = #tpu.dot_dimension_numbers<[1], [0], [0], [1], [0, 0, 1, 1], [], []>} : vector<2x64xf32>, vector<64x256xf32>, vector<2x256xf32> -> vector<2x256xf32>
    %175 = arith.addf %173, %174 : vector<2x256xf32>
    %176 = vector.extract_strided_slice %175 {offsets = [0, 0], sizes = [2, 192], strides = [1, 1]} : vector<2x256xf32> to vector<2x192xf32>
    %177 = arith.negf %176 : vector<2x192xf32>
    %178 = math.exp %177 : vector<2x192xf32>
    %cst_39 = arith.constant 1.000000e+00 : f32
    %179 = vector.broadcast %cst_39 : f32 to vector<2x192xf32>
    %180 = arith.addf %179, %178 : vector<2x192xf32>
    %181 = arith.divf %179, %180 : vector<2x192xf32>
    %182 = vector.extract_strided_slice %175 {offsets = [0, 192], sizes = [2, 64], strides = [1, 1]} : vector<2x256xf32> to vector<2x64xf32>
    %183 = math.tanh %182 : vector<2x64xf32>
    %184 = vector.extract_strided_slice %181 {offsets = [0, 64], sizes = [2, 64], strides = [1, 1]} : vector<2x192xf32> to vector<2x64xf32>
    %185 = arith.mulf %184, %165 : vector<2x64xf32>
    %186 = vector.extract_strided_slice %181 {offsets = [0, 0], sizes = [2, 64], strides = [1, 1]} : vector<2x192xf32> to vector<2x64xf32>
    %187 = arith.mulf %186, %183 : vector<2x64xf32>
    %188 = arith.addf %185, %187 : vector<2x64xf32>
    %189 = vector.extract_strided_slice %181 {offsets = [0, 128], sizes = [2, 64], strides = [1, 1]} : vector<2x192xf32> to vector<2x64xf32>
    %190 = math.tanh %188 : vector<2x64xf32>
    %191 = arith.mulf %189, %190 : vector<2x64xf32>
    %c0_40 = arith.constant 0 : index
    %c7 = arith.constant 7 : index
    %c0_41 = arith.constant 0 : index
    %192 = vector.load %arg5[%c0_40, %c7, %c0_41] : memref<2x8x64xf32, #tpu.memory_space<vmem>>, vector<2x1x64xf32>
    %193 = vector.shape_cast %192 : vector<2x1x64xf32> to vector<2x64xf32>
    %194 = vector.shape_cast %191 : vector<2x64xf32> to vector<2x1x64xf32>
    tpu.vector_store %arg5[%c0_40, %c7, %c0_41], %194 {strides = array<i32>} : memref<2x8x64xf32, #tpu.memory_space<vmem>>, vector<2x1x64xf32>,
    %c0_42 = arith.constant 0 : index
    %c0_43 = arith.constant 0 : index
    %c0_44 = arith.constant 0 : index
    %195 = vector.load %arg5[%c0_42, %c0_43, %c0_44] : memref<2x8x64xf32, #tpu.memory_space<vmem>>, vector<2x8x64xf32>
    %c0_45 = arith.constant 0 : index
    %c512 = arith.constant 512 : index
    %196 = vector.load %arg2[%c0_45, %c512] : memref<64x896xf32, #tpu.memory_space<vmem>>, vector<64x192xf32>
    %c0_46 = arith.constant 0 : index
    %c704 = arith.constant 704 : index
    %197 = vector.load %arg2[%c0_46, %c704] : memref<64x896xf32, #tpu.memory_space<vmem>>, vector<64x64xf32>
    %c0_47 = arith.constant 0 : index
    %c768 = arith.constant 768 : index
    %198 = vector.load %arg2[%c0_47, %c768] : memref<64x896xf32, #tpu.memory_space<vmem>>, vector<64x64xf32>
    %c0_48 = arith.constant 0 : index
    %c832 = arith.constant 832 : index
    %199 = vector.load %arg2[%c0_48, %c832] : memref<64x896xf32, #tpu.memory_space<vmem>>, vector<64x64xf32>
    %c1_49 = arith.constant 1 : index
    %c0_50 = arith.constant 0 : index
    %200 = vector.load %arg3[%c1_49, %c0_50] : memref<8x256xf32, #tpu.memory_space<vmem>>, vector<1x192xf32>
    %c2_51 = arith.constant 2 : index
    %c0_52 = arith.constant 0 : index
    %201 = vector.load %arg3[%c2_51, %c0_52] : memref<8x256xf32, #tpu.memory_space<vmem>>, vector<1x64xf32>
    %c2_53 = arith.constant 2 : index
    %c64 = arith.constant 64 : index
    %202 = vector.load %arg3[%c2_53, %c64] : memref<8x256xf32, #tpu.memory_space<vmem>>, vector<1x64xf32>
    %c2_54 = arith.constant 2 : index
    %c128 = arith.constant 128 : index
    %203 = vector.load %arg3[%c2_54, %c128] : memref<8x256xf32, #tpu.memory_space<vmem>>, vector<1x64xf32>
    %c2_55 = arith.constant 2 : index
    %c192 = arith.constant 192 : index
    %204 = vector.load %arg3[%c2_55, %c192] : memref<8x256xf32, #tpu.memory_space<vmem>>, vector<1x64xf32>
    %c3_56 = arith.constant 3 : index
    %c0_57 = arith.constant 0 : index
    %205 = vector.load %arg3[%c3_56, %c0_57] : memref<8x256xf32, #tpu.memory_space<vmem>>, vector<1x64xf32>
    %c3_58 = arith.constant 3 : index
    %c64_59 = arith.constant 64 : index
    %206 = vector.load %arg3[%c3_58, %c64_59] : memref<8x256xf32, #tpu.memory_space<vmem>>, vector<1x64xf32>
    %c3_60 = arith.constant 3 : index
    %c128_61 = arith.constant 128 : index
    %207 = vector.load %arg3[%c3_60, %c128_61] : memref<8x256xf32, #tpu.memory_space<vmem>>, vector<1x64xf32>
    %c3_62 = arith.constant 3 : index
    %c192_63 = arith.constant 192 : index
    %208 = vector.load %arg3[%c3_62, %c192_63] : memref<8x256xf32, #tpu.memory_space<vmem>>, vector<1x64xf32>
    %c4_64 = arith.constant 4 : index
    %c0_65 = arith.constant 0 : index
    %209 = vector.load %arg3[%c4_64, %c0_65] : memref<8x256xf32, #tpu.memory_space<vmem>>, vector<1x1xf32>
    %210 = vector.shape_cast %195 : vector<2x8x64xf32> to vector<16x64xf32>
    %cst_66 = arith.constant dense<0.000000e+00> : vector<16x192xf32>
    %211 = tpu.matmul %210, %196, %cst_66 {dimension_numbers = #tpu.dot_dimension_numbers<[1], [0], [0], [1], [0, 0, 1, 1], [], []>} : vector<16x64xf32>, vector<64x192xf32>, vector<16x192xf32> -> vector<16x192xf32>
    %212 = vector.broadcast %200 : vector<1x192xf32> to vector<16x192xf32>
    %213 = arith.addf %211, %212 : vector<16x192xf32>
    %214 = vector.extract_strided_slice %213 {offsets = [0, 0], sizes = [16, 64], strides = [1, 1]} : vector<16x192xf32> to vector<16x64xf32>
    %215 = vector.shape_cast %214 : vector<16x64xf32> to vector<2x8x64xf32>
    %216 = vector.extract_strided_slice %213 {offsets = [0, 64], sizes = [16, 64], strides = [1, 1]} : vector<16x192xf32> to vector<16x64xf32>
    %217 = vector.shape_cast %216 : vector<16x64xf32> to vector<2x8x64xf32>
    %218 = vector.extract_strided_slice %213 {offsets = [0, 128], sizes = [16, 64], strides = [1, 1]} : vector<16x192xf32> to vector<16x64xf32>
    %219 = vector.shape_cast %218 : vector<16x64xf32> to vector<2x8x64xf32>
    %c0_67 = arith.constant 0 : index
    %c0_68 = arith.constant 0 : index
    %220 = vector.load %arg1[%c0_67, %c0_68] : memref<2x8xf32, #tpu.memory_space<vmem>>, vector<2x8xf32>
    %cst_69 = arith.constant 1.000000e+00 : f32
    %221 = vector.broadcast %cst_69 : f32 to vector<2x8xf32>
    %222 = arith.subf %221, %220 : vector<2x8xf32>
    %223 = vector.shape_cast %222 : vector<2x8xf32> to vector<2x1x8xf32>
    %cst_70 = arith.constant -1.000000e+04 : f32
    %224 = vector.broadcast %cst_70 : f32 to vector<2x1x8xf32>
    %225 = arith.mulf %223, %224 : vector<2x1x8xf32>
    %226 = vector.extract_strided_slice %215 {offsets = [0, 0, 0], sizes = [2, 8, 32], strides = [1, 1, 1]} : vector<2x8x64xf32> to vector<2x8x32xf32>
    %227 = vector.extract_strided_slice %217 {offsets = [0, 0, 0], sizes = [2, 8, 32], strides = [1, 1, 1]} : vector<2x8x64xf32> to vector<2x8x32xf32>
    "tpu.trace_start"() <{level = 10 : i32, message = "bqd,bkd->bqk"}> : () -> ()
    %cst_71 = arith.constant dense<0.000000e+00> : vector<2x8x8xf32>
    %228 = tpu.matmul %226, %227, %cst_71 {dimension_numbers = #tpu.dot_dimension_numbers<[2], [2], [1], [1], [0, 0, 0, 1, 1, 1], [0], [0]>} : vector<2x8x32xf32>, vector<2x8x32xf32>, vector<2x8x8xf32> -> vector<2x8x8xf32>
    "tpu.trace_stop"() : () -> ()
    %cst_72 = arith.constant 0.176776692 : f32
    %229 = vector.broadcast %cst_72 : f32 to vector<2x8x8xf32>
    %230 = arith.mulf %228, %229 : vector<2x8x8xf32>
    %231 = vector.broadcast %225 : vector<2x1x8xf32> to vector<2x8x8xf32>
    %232 = arith.addf %230, %231 : vector<2x8x8xf32>
    %cst_73 = arith.constant dense<0xFF800000> : vector<2x8xf32>
    %233 = vector.multi_reduction <maximumf>, %232, %cst_73 [2] : vector<2x8x8xf32> to vector<2x8xf32>
    %234 = vector.shape_cast %233 : vector<2x8xf32> to vector<2x8x1xf32>
    %235 = vector.broadcast %234 : vector<2x8x1xf32> to vector<2x8x8xf32>
    %236 = arith.subf %232, %235 : vector<2x8x8xf32>
    %237 = math.exp %236 : vector<2x8x8xf32>
    %cst_74 = arith.constant dense<0.000000e+00> : vector<2x8xf32>
    %238 = vector.multi_reduction <add>, %237, %cst_74 [2] : vector<2x8x8xf32> to vector<2x8xf32>
    %239 = vector.shape_cast %238 : vector<2x8xf32> to vector<2x8x1xf32>
    %240 = tpu.reciprocal %239 {approx = true} : vector<2x8x1xf32> -> vector<2x8x1xf32>
    %241 = vector.broadcast %240 : vector<2x8x1xf32> to vector<2x8x8xf32>
    %242 = arith.mulf %237, %241 : vector<2x8x8xf32>
    %243 = vector.extract_strided_slice %219 {offsets = [0, 0, 0], sizes = [2, 8, 32], strides = [1, 1, 1]} : vector<2x8x64xf32> to vector<2x8x32xf32>
    "tpu.trace_start"() <{level = 10 : i32, message = "bqk,bkd->bqd"}> : () -> ()
    %cst_75 = arith.constant dense<0.000000e+00> : vector<2x8x32xf32>
    %244 = tpu.matmul %242, %243, %cst_75 {dimension_numbers = #tpu.dot_dimension_numbers<[2], [1], [1], [2], [0, 0, 0, 1, 1, 2], [0], [0]>} : vector<2x8x8xf32>, vector<2x8x32xf32>, vector<2x8x32xf32> -> vector<2x8x32xf32>
    "tpu.trace_stop"() : () -> ()
    %245 = vector.extract_strided_slice %215 {offsets = [0, 0, 32], sizes = [2, 8, 32], strides = [1, 1, 1]} : vector<2x8x64xf32> to vector<2x8x32xf32>
    %246 = vector.extract_strided_slice %217 {offsets = [0, 0, 32], sizes = [2, 8, 32], strides = [1, 1, 1]} : vector<2x8x64xf32> to vector<2x8x32xf32>
    "tpu.trace_start"() <{level = 10 : i32, message = "bqd,bkd->bqk"}> : () -> ()
    %cst_76 = arith.constant dense<0.000000e+00> : vector<2x8x8xf32>
    %247 = tpu.matmul %245, %246, %cst_76 {dimension_numbers = #tpu.dot_dimension_numbers<[2], [2], [1], [1], [0, 0, 0, 1, 1, 1], [0], [0]>} : vector<2x8x32xf32>, vector<2x8x32xf32>, vector<2x8x8xf32> -> vector<2x8x8xf32>
    "tpu.trace_stop"() : () -> ()
    %cst_77 = arith.constant 0.176776692 : f32
    %248 = vector.broadcast %cst_77 : f32 to vector<2x8x8xf32>
    %249 = arith.mulf %247, %248 : vector<2x8x8xf32>
    %250 = vector.broadcast %225 : vector<2x1x8xf32> to vector<2x8x8xf32>
    %251 = arith.addf %249, %250 : vector<2x8x8xf32>
    %cst_78 = arith.constant dense<0xFF800000> : vector<2x8xf32>
    %252 = vector.multi_reduction <maximumf>, %251, %cst_78 [2] : vector<2x8x8xf32> to vector<2x8xf32>
    %253 = vector.shape_cast %252 : vector<2x8xf32> to vector<2x8x1xf32>
    %254 = vector.broadcast %253 : vector<2x8x1xf32> to vector<2x8x8xf32>
    %255 = arith.subf %251, %254 : vector<2x8x8xf32>
    %256 = math.exp %255 : vector<2x8x8xf32>
    %cst_79 = arith.constant dense<0.000000e+00> : vector<2x8xf32>
    %257 = vector.multi_reduction <add>, %256, %cst_79 [2] : vector<2x8x8xf32> to vector<2x8xf32>
    %258 = vector.shape_cast %257 : vector<2x8xf32> to vector<2x8x1xf32>
    %259 = tpu.reciprocal %258 {approx = true} : vector<2x8x1xf32> -> vector<2x8x1xf32>
    %260 = vector.broadcast %259 : vector<2x8x1xf32> to vector<2x8x8xf32>
    %261 = arith.mulf %256, %260 : vector<2x8x8xf32>
    %262 = vector.extract_strided_slice %219 {offsets = [0, 0, 32], sizes = [2, 8, 32], strides = [1, 1, 1]} : vector<2x8x64xf32> to vector<2x8x32xf32>
    "tpu.trace_start"() <{level = 10 : i32, message = "bqk,bkd->bqd"}> : () -> ()
    %cst_80 = arith.constant dense<0.000000e+00> : vector<2x8x32xf32>
    %263 = tpu.matmul %261, %262, %cst_80 {dimension_numbers = #tpu.dot_dimension_numbers<[2], [1], [1], [2], [0, 0, 0, 1, 1, 2], [0], [0]>} : vector<2x8x8xf32>, vector<2x8x32xf32>, vector<2x8x32xf32> -> vector<2x8x32xf32>
    "tpu.trace_stop"() : () -> ()
    %264 = tpu.concatenate %244, %263 in 2 : vector<2x8x32xf32>, vector<2x8x32xf32> -> vector<2x8x64xf32>
    %265 = vector.shape_cast %264 : vector<2x8x64xf32> to vector<16x64xf32>
    %cst_81 = arith.constant dense<0.000000e+00> : vector<16x64xf32>
    %266 = tpu.matmul %265, %197, %cst_81 {dimension_numbers = #tpu.dot_dimension_numbers<[1], [0], [0], [1], [0, 0, 1, 1], [], []>} : vector<16x64xf32>, vector<64x64xf32>, vector<16x64xf32> -> vector<16x64xf32>
    %267 = vector.broadcast %201 : vector<1x64xf32> to vector<16x64xf32>
    %268 = arith.addf %266, %267 : vector<16x64xf32>
    %269 = arith.addf %268, %210 : vector<16x64xf32>
    %cst_82 = arith.constant dense<0.000000e+00> : vector<16xf32>
    %270 = vector.multi_reduction <add>, %269, %cst_82 [1] : vector<16x64xf32> to vector<16xf32>
    %271 = vector.shape_cast %270 : vector<16xf32> to vector<16x1xf32>
    %cst_83 = arith.constant 6.400000e+01 : f32
    %272 = vector.broadcast %cst_83 : f32 to vector<16x1xf32>
    %273 = arith.divf %271, %272 : vector<16x1xf32>
    %274 = vector.broadcast %273 : vector<16x1xf32> to vector<16x64xf32>
    %275 = arith.subf %269, %274 : vector<16x64xf32>
    %276 = arith.mulf %275, %275 : vector<16x64xf32>
    %cst_84 = arith.constant dense<0.000000e+00> : vector<16xf32>
    %277 = vector.multi_reduction <add>, %276, %cst_84 [1] : vector<16x64xf32> to vector<16xf32>
    %278 = vector.shape_cast %277 : vector<16xf32> to vector<16x1xf32>
    %cst_85 = arith.constant 6.400000e+01 : f32
    %279 = vector.broadcast %cst_85 : f32 to vector<16x1xf32>
    %280 = arith.divf %278, %279 : vector<16x1xf32>
    %281 = vector.broadcast %273 : vector<16x1xf32> to vector<16x64xf32>
    %282 = arith.subf %269, %281 : vector<16x64xf32>
    %cst_86 = arith.constant 9.99999996E-13 : f32
    %283 = vector.broadcast %cst_86 : f32 to vector<16x1xf32>
    %284 = arith.addf %280, %283 : vector<16x1xf32>
    %285 = math.rsqrt %284 : vector<16x1xf32>
    %286 = vector.broadcast %285 : vector<16x1xf32> to vector<16x64xf32>
    %287 = arith.mulf %282, %286 : vector<16x64xf32>
    %288 = vector.broadcast %202 : vector<1x64xf32> to vector<16x64xf32>
    %289 = arith.mulf %287, %288 : vector<16x64xf32>
    %290 = vector.broadcast %203 : vector<1x64xf32> to vector<16x64xf32>
    %291 = arith.addf %289, %290 : vector<16x64xf32>
    %cst_87 = arith.constant dense<0.000000e+00> : vector<16x64xf32>
    %292 = tpu.matmul %291, %198, %cst_87 {dimension_numbers = #tpu.dot_dimension_numbers<[1], [0], [0], [1], [0, 0, 1, 1], [], []>} : vector<16x64xf32>, vector<64x64xf32>, vector<16x64xf32> -> vector<16x64xf32>
    %293 = vector.broadcast %204 : vector<1x64xf32> to vector<16x64xf32>
    %294 = arith.addf %292, %293 : vector<16x64xf32>
    %cst_88 = arith.constant 5.000000e-01 : f32
    %295 = vector.broadcast %cst_88 : f32 to vector<16x64xf32>
    %296 = arith.mulf %295, %294 : vector<16x64xf32>
    %cst_89 = arith.constant 4.471500e-02 : f32
    %297 = vector.broadcast %cst_89 : f32 to vector<16x64xf32>
    %298 = arith.mulf %297, %294 : vector<16x64xf32>
    %299 = arith.mulf %298, %294 : vector<16x64xf32>
    %300 = arith.mulf %299, %294 : vector<16x64xf32>
    %301 = arith.addf %294, %300 : vector<16x64xf32>
    %cst_90 = arith.constant 0.797884583 : f32
    %302 = vector.broadcast %cst_90 : f32 to vector<16x64xf32>
    %303 = arith.mulf %302, %301 : vector<16x64xf32>
    %304 = math.tanh %303 : vector<16x64xf32>
    %cst_91 = arith.constant 1.000000e+00 : f32
    %305 = vector.broadcast %cst_91 : f32 to vector<16x64xf32>
    %306 = arith.addf %305, %304 : vector<16x64xf32>
    %307 = arith.mulf %296, %306 : vector<16x64xf32>
    %cst_92 = arith.constant dense<0.000000e+00> : vector<16x64xf32>
    %308 = tpu.matmul %307, %199, %cst_92 {dimension_numbers = #tpu.dot_dimension_numbers<[1], [0], [0], [1], [0, 0, 1, 1], [], []>} : vector<16x64xf32>, vector<64x64xf32>, vector<16x64xf32> -> vector<16x64xf32>
    %309 = vector.broadcast %205 : vector<1x64xf32> to vector<16x64xf32>
    %310 = arith.addf %308, %309 : vector<16x64xf32>
    %311 = arith.addf %310, %291 : vector<16x64xf32>
    %cst_93 = arith.constant dense<0.000000e+00> : vector<16xf32>
    %312 = vector.multi_reduction <add>, %311, %cst_93 [1] : vector<16x64xf32> to vector<16xf32>
    %313 = vector.shape_cast %312 : vector<16xf32> to vector<16x1xf32>
    %cst_94 = arith.constant 6.400000e+01 : f32
    %314 = vector.broadcast %cst_94 : f32 to vector<16x1xf32>
    %315 = arith.divf %313, %314 : vector<16x1xf32>
    %316 = vector.broadcast %315 : vector<16x1xf32> to vector<16x64xf32>
    %317 = arith.subf %311, %316 : vector<16x64xf32>
    %318 = arith.mulf %317, %317 : vector<16x64xf32>
    %cst_95 = arith.constant dense<0.000000e+00> : vector<16xf32>
    %319 = vector.multi_reduction <add>, %318, %cst_95 [1] : vector<16x64xf32> to vector<16xf32>
    %320 = vector.shape_cast %319 : vector<16xf32> to vector<16x1xf32>
    %cst_96 = arith.constant 6.400000e+01 : f32
    %321 = vector.broadcast %cst_96 : f32 to vector<16x1xf32>
    %322 = arith.divf %320, %321 : vector<16x1xf32>
    %323 = vector.broadcast %315 : vector<16x1xf32> to vector<16x64xf32>
    %324 = arith.subf %311, %323 : vector<16x64xf32>
    %cst_97 = arith.constant 9.99999996E-13 : f32
    %325 = vector.broadcast %cst_97 : f32 to vector<16x1xf32>
    %326 = arith.addf %322, %325 : vector<16x1xf32>
    %327 = math.rsqrt %326 : vector<16x1xf32>
    %328 = vector.broadcast %327 : vector<16x1xf32> to vector<16x64xf32>
    %329 = arith.mulf %324, %328 : vector<16x64xf32>
    %330 = vector.broadcast %206 : vector<1x64xf32> to vector<16x64xf32>
    %331 = arith.mulf %329, %330 : vector<16x64xf32>
    %332 = vector.broadcast %207 : vector<1x64xf32> to vector<16x64xf32>
    %333 = arith.addf %331, %332 : vector<16x64xf32>
    %334 = vector.shape_cast %333 : vector<16x64xf32> to vector<2x8x64xf32>
    %335 = vector.shape_cast %208 : vector<1x64xf32> to vector<1x1x64xf32>
    %336 = vector.broadcast %335 : vector<1x1x64xf32> to vector<2x8x64xf32>
    %337 = arith.mulf %334, %336 : vector<2x8x64xf32>
    %cst_98 = arith.constant dense<0.000000e+00> : vector<2x8xf32>
    %338 = vector.multi_reduction <add>, %337, %cst_98 [2] : vector<2x8x64xf32> to vector<2x8xf32>
    %339 = vector.broadcast %209 : vector<1x1xf32> to vector<2x8xf32>
    %340 = arith.addf %338, %339 : vector<2x8xf32>
    %341 = arith.negf %340 : vector<2x8xf32>
    %342 = math.exp %341 : vector<2x8xf32>
    %cst_99 = arith.constant 1.000000e+00 : f32
    %343 = vector.broadcast %cst_99 : f32 to vector<2x8xf32>
    %344 = arith.addf %343, %342 : vector<2x8xf32>
    %345 = arith.divf %343, %344 : vector<2x8xf32>
    %c0_100 = arith.constant 0 : index
    %c0_101 = arith.constant 0 : index
    %346 = vector.load %arg4[%c0_100, %c0_101] : memref<2x8xf32, #tpu.memory_space<vmem>>, vector<2x8xf32>
    tpu.vector_store %arg4[%c0_100, %c0_101], %345 {strides = array<i32>} : memref<2x8xf32, #tpu.memory_space<vmem>>, vector<2x8xf32>,
    return
  }
}

</mosaic_0001>

<bundles_post_ra>
// kernel: lstmattn_forward.1
= control target key start
LH: loop header
LB: loop body
LE: loop exit
PB: predicated region body
PF: predicated region fallthrough
CT: control target
= control target key end

     0   :  { %9 = vsyncpa [#allocation4], 0  ;;  %s4009_s0 = inlined_call_operand.vmem [shape: f32[2,8,64], index: 0, kind: input, shape index: {}]   ;;  %s4010_s1 = inlined_call_operand.vmem [shape: f32[2,8], index: 1, kind: input, shape index: {}]   ;;  %s4011_s2 = inlined_call_operand.hbm [shape: f32[64,896], index: 2, kind: input, shape index: {}]   ;;  %s4012_s3 = inlined_call_operand.vmem [shape: f32[8,256], index: 3, kind: input, shape index: {}]   ;;  %s4013_s4 = inlined_call_operand.hbm [shape: f32[2,8], index: 4, kind: output, shape index: {}]  }
   0x1   :  { %10 = vsyncpa [#allocation5], 0  ;;  %s3485_s15 = smov [#allocation3]   ;;  %s3437_s19 = scalar_lea.hbm %s4011_s2, 7168 }
   0x2   :  { %s20_s16 = sshll.u32 %s3485_s15, 4  ;;  %p3438_p0 = scmp.ne.s32.totalorder %s4011_s2, %s3437_s19  ;;  %s21_s16 = int_to_ptr.vmem [resolvable:$true] %s20_s16 }
   0x3   :  { %p3441_p1 = scmp.lt.u32.totalorder %s3437_s19, %s4011_s2 }
   0x5   :  { %p3443_p2 = pnand %p3441_p1, %p3438_p0 }
   0x7   :  { %3446 = shalt.err (!%p3443_p2)
}
   0x8   :  { %s3447_s24 = scalar_lea.vmem %s21_s16, 7168  ;;  %p3452_p4 = scmp.lt.s32.totalorder %s21_s16, %s21_s16 }
   0x9   :  { %p3448_p3 = scmp.ne.s32.totalorder %s21_s16, %s3447_s24  ;;  %p3453_p5 = scmp.lt.s32.totalorder %s3447_s24, %s3447_s24 }
   0xb   :  { %p3454_p6 = por %p3453_p5, %p3452_p4 }
   0xd   :  { %p3455_p7 = pnand %p3454_p6, %p3448_p3 }
   0xf   :  { %3458 = shalt.err (!%p3455_p7)
}
  0x10   :  { %s3486_s25 = smov 896   ;;  %s3487_s26 = smov 56  }
  0x11   :  { %26 = dma.hbm_to_vmem [thread:$0]  %s4011_s2, 7168, %s21_s16, [#allocation4], %s3486_s25, %s3486_s25, %s3487_s26  }
  0x12   :  { %3481 = dma.done.wait [#allocation4], 7168  }
  0x13   :  { %3482 = vsyncadd [#allocation4], 4294960128  ;;  %v3488_v0 = vmov 0.0   ;;  %v35_v1 = vld [vmem:[#allocation3 + $0x8] sm:$0xff]  ;;  %v37_v2 = vld [vmem:[#allocation3 + $0x40] sm:$0xff]  ;;  %vm78_vm0 = vcmask 523264   ;;  %v68_v51 = vlaneseq }
  0x14   :  { %149 = vmatprep.mubr.f32.mxu0 %v3488_v0  ;;  %229 = vmatprep.mubr.f32.mxu1 %v3488_v0  ;;  %v34_v3 = vld [vmem:[#allocation3] sm:$0xff]  ;;  %v2948_v4 = vpack.c.bf16 %v37_v2, %v35_v1  ;;  %v36_v5 = vld [vmem:[#allocation3 + $0x38] sm:$0xff]  ;;  %v53_v7 = vld [vmem:[#allocation3 + $0x50] sm:$0xff]  ;;  %s3489_s7 = smov 64   ;;  %vm308_vm1 = vcmask 516096   ;;  %vm314_vm2 = vcmask 1041409  }
  0x15   :  { %v51_v6 = vld [vmem:[#allocation3 + $0x18] sm:$0xff]  ;;  %v2950_v8 = vpack.c.bf16 %v36_v5, %v34_v3  ;;  %v50_v10 = vld [vmem:[#allocation3 + $0x10] sm:$0xff]  ;;  %v52_v11 = vld [vmem:[#allocation3 + $0x48] sm:$0xff]  ;;  %v3590_v52 = vshrl.u32 %v68_v51, 7  ;;  %vm467_vm3 = vcmask 517121   ;;  %vm627_vm4 = vcmask 518146  }
  0x16   :  { %v3535_v9 = vpack.c.bf16 %v53_v7, %v51_v6  ;;  %v39_v12 = vld [vmem:[#allocation3 + $0x78] sm:$0xff]  ;;  %2949 = vmatprep.subr.bf16.mxu0 %v2948_v4  ;;  %v3537_v13 = vpack.c.bf16 %v52_v11, %v50_v10  ;;  %v41_v14 = vld [vmem:[#allocation3 + $0xb0] sm:$0xff]  ;;  %v40_v16 = vld [vmem:[#allocation3 + $0xa8] sm:$0xff]  ;;  %vm788_vm5 = vcmask 519171   ;;  %vm949_vm6 = vcmask 520196   ;;  %s3493_s12 = smov 96  }
  0x17   :  { %v38_v15 = vld [vmem:[#allocation3 + $0x70] sm:$0xff]  ;;  %2951 = vmatpush1.bf16.msra.mxu0 %v2950_v8  ;;  %v2952_v17 = vpack.c.bf16 %v41_v14, %v39_v12  ;;  %v55_v19 = vld [vmem:[#allocation3 + $0x88] sm:$0xff]  ;;  %v57_v20 = vld [vmem:[#allocation3 + $0xc0] sm:$0xff]  ;;  %v74_v53 = vsub.s32 1, %v3590_v52  ;;  %v3607_v6 = vsub.s32 0, %v3590_v52  ;;  %vm1110_vm7 = vcmask 521221  }
  0x18   :  { %2965 = vmatprep.subr.bf16.mxu1 %v3535_v9  ;;  %v2954_v18 = vpack.c.bf16 %v40_v16, %v38_v15  ;;  %v54_v21 = vld [vmem:[#allocation3 + $0x80] sm:$0xff]  ;;  %v3541_v22 = vpack.c.bf16 %v57_v20, %v55_v19  ;;  %v56_v23 = vld [vmem:[#allocation3 + $0xb8] sm:$0xff]  ;;  %v43_v24 = vld [vmem:[#allocation3 + $0xe8] sm:$0xff]  ;;  %vm1271_vm8 = vcmask 522246   ;;  %vm1432_vm9 = vcmask 523271  }
  0x19   :  { %2967 = vmatpush1.bf16.msra.mxu1 %v3537_v13  ;;  %v45_v25 = vld [vmem:[#allocation3 + $0x120] sm:$0xff]  ;;  %2953 = vmatprep.subr.bf16.mxu0 %v2952_v17  ;;  %v3543_v26 = vpack.c.bf16 %v56_v23, %v54_v21  ;;  %v44_v29 = vld [vmem:[#allocation3 + $0x118] sm:$0xff]  ;;  %v61_v31 = vld [vmem:[#allocation3 + $0x130] sm:$0xff]  ;;  %vm3490_vm10 = vmmov 0   ;;  %vm1594_vm11 = vcmask 261120   ;;  %vm1762_vm12 = vcmask 64512  }
  0x1a   :  { %v2956_v27 = vpack.c.bf16 %v45_v25, %v43_v24  ;;  %v42_v28 = vld [vmem:[#allocation3 + $0xe0] sm:$0xff]  ;;  %v59_v30 = vld [vmem:[#allocation3 + $0xf8] sm:$0xff]  ;;  %2969 = vmatprep.subr.bf16.mxu1 %v3541_v22  ;;  %v58_v32 = vld [vmem:[#allocation3 + $0xf0] sm:$0xff]  ;;  %vm2724_vm13 = vcmask 58368  }
  0x1b   :  { %v60_v33 = vld [vmem:[#allocation3 + $0x128] sm:$0xff]  ;;  %2955 = vmatpush1.bf16.msra.mxu0 %v2954_v18  ;;  %v2958_v34 = vpack.c.bf16 %v44_v29, %v42_v28  ;;  %v3546_v35 = vpack.c.bf16 %v61_v31, %v59_v30  ;;  %v47_v36 = vld [vmem:[#allocation3 + $0x158] sm:$0xff]  ;;  %v49_v37 = vld [vmem:[#allocation3 + $0x190] sm:$0xff] }
  0x1c   :  { %v46_v38 = vld [vmem:[#allocation3 + $0x150] sm:$0xff]  ;;  %2957 = vmatprep.subr.bf16.mxu0 %v2956_v27  ;;  %v3549_v39 = vpack.c.bf16 %v60_v33, %v58_v32  ;;  %v2960_v40 = vpack.c.bf16 %v49_v37, %v47_v36  ;;  %v48_v41 = vld [vmem:[#allocation3 + $0x188] sm:$0xff]  ;;  %v65_v43 = vld [vmem:[#allocation3 + $0x1a0] sm:$0xff] }
  0x1d   :  { %2971 = vmatpush1.bf16.msra.mxu1 %v3543_v26  ;;  %v63_v42 = vld [vmem:[#allocation3 + $0x168] sm:$0xff]  ;;  %v62_v45 = vld [vmem:[#allocation3 + $0x160] sm:$0xff]  ;;  %v64_v46 = vld [vmem:[#allocation3 + $0x198] sm:$0xff]  ;;  %v2962_v47 = vpack.c.bf16 %v48_v41, %v46_v38 }
  0x1e   :  { %2973 = vmatprep.subr.bf16.mxu1 %v3546_v35  ;;  %v3552_v44 = vpack.c.bf16 %v65_v43, %v63_v42  ;;  %v3555_v48 = vpack.c.bf16 %v64_v46, %v62_v45  ;;  %v32_v49 = vld [vmem:[%s4009_s0] sm:$0xff]  ;;  %v33_v50 = vld [vmem:[%s4009_s0 + $0x8] sm:$0xff] }
  0x1f   :  { %2959 = vmatpush1.bf16.msra.mxu0 %v2958_v34  ;;  %v66_v54 = vld [vmem:[%s4012_s3] ss:$8 sm:$0x3] }
  0x20   :  { %2961 = vmatprep.subr.bf16.mxu0 %v2960_v40  ;;  %v75_v58 = vrot.slane %v66_v54, %v74_v53  ;;  %v71_v7 = vrot.slane %v66_v54, %v3607_v6 }
  0x21   :  { %2975 = vmatpush1.bf16.msra.mxu1 %v3549_v39 }
  0x22   :  { %2977 = vmatprep.subr.bf16.mxu1 %v3552_v44 }
  0x23   :  { %2963 = vmatpush1.bf16.msra.mxu0 %v2962_v47 }
  0x24   :  { %2981 = vmatprep.subr.bf16.mxu0 %v3535_v9 }
  0x25   :  { %2979 = vmatpush1.bf16.msra.mxu1 %v3555_v48 }
  0x26   :  { %2997 = vmatprep.subr.bf16.mxu1 %v3535_v9  ;;  %2741 = vmatmul.mubr.msk.f32.vlgmr.msra.gmra.mrb[0].mxu0 %vm78_vm0, %v32_v49 }
  0x27   :  { %155 = vmatprep.mubr.f32.mxu0 %v3488_v0  ;;  %2983 = vmatpush1.bf16.msra.mxu0 %v3537_v13 }
  0x28   :  { %230 = vmatmul.mubr.f32.vlgmr.msra.gmra.mrb[0].mxu1 %v3488_v0  ;;  %2985 = vmatprep.subr.bf16.mxu0 %v3541_v22 }
  0x29   :  { %2999 = vmatpush1.bf16.msra.mxu1 %v3537_v13  ;;  %540 = vmatprep.mubr.f32.mxu1 %v3488_v0 }
  0x2a   :  { %3001 = vmatprep.subr.bf16.mxu1 %v3541_v22  ;;  %2742 = vmatmul.mubr.msk.f32.gmra.mrb[2].mxu0 %vm78_vm0, %v33_v50 }
  0x2b   :  { %382 = vmatprep.mubr.f32.mxu0 %v3488_v0  ;;  %2987 = vmatpush1.bf16.msra.mxu0 %v3543_v26 }
  0x2c   :  { %2989 = vmatprep.subr.bf16.mxu0 %v3546_v35 }
  0x2d   :  { %3003 = vmatpush1.bf16.msra.mxu1 %v3543_v26 }
  0x2e   :  { %3005 = vmatprep.subr.bf16.mxu1 %v3546_v35 }
  0x2f   :  { %2991 = vmatpush1.bf16.msra.mxu0 %v3549_v39 }
  0x30   :  { %2993 = vmatprep.subr.bf16.mxu0 %v3552_v44 }
  0x31   :  { %3007 = vmatpush1.bf16.msra.mxu1 %v3549_v39 }
  0x32   :  { %3009 = vmatprep.subr.bf16.mxu1 %v3552_v44 }
  0x33   :  { %2995 = vmatpush1.bf16.msra.mxu0 %v3555_v48 }
  0x34   :  { %3013 = vmatprep.subr.bf16.mxu0 %v3535_v9 }
  0x35   :  { %3011 = vmatpush1.bf16.msra.mxu1 %v3555_v48 }
  0x36   :  { %3029 = vmatprep.subr.bf16.mxu1 %v3535_v9 }
  0xf9   :  { %v151_v55 = vpop.f32.mrb[0].mxu0 }
  0xfa   :  { %v153_v56 = vpop.f32.mrb[1].mxu0  ;;  %v3612_v11 = vadd.f32 %v151_v55, %v71_v7 }
  0xfb   :  { %v231_v57 = vpop.f32.mrb[0].mxu1  ;;  %v3598_v63 = vadd.f32 %v153_v56, %v75_v58 }
  0xfc   :  { %v233_v59 = vpop.f32.mrb[1].mxu1  ;;  %v238_v8 = vrot.slane %v231_v57, 1  ;;  %v244_v14 = vadd.f32 %v231_v57, %v3612_v11 }
  0xfd   :  { %v239_v60 = vrot.slane %v233_v59, 1  ;;  %v157_v61 = vpop.f32.mrb[2].mxu0  ;;  %v245_v3 = vadd.f32 %v233_v59, %v3598_v63 }
  0xfe   :  { %v159_v62 = vpop.f32.mrb[3].mxu0  ;;  %v3610_v10 = vadd.f32 %v157_v61, %v71_v7  ;;  %v2743_v16 = vmul.f32 -1.442695, %v244_v14 }
  0xff   :  { %v3600_v1 = vadd.f32 %v159_v62, %v75_v58  ;;  %v2744_v40 = vmul.f32 -1.442695, %v245_v3 }
 0x100   :  { %v246_v12 = vadd.f32 %v238_v8, %v3610_v10 }
 0x101   :  { %v247_v2 = vadd.f32 %v239_v60, %v3600_v1 }
 0x102   :  { %v2745_v15 = vmul.f32 -1.442695, %v246_v12 }
 0x103   :  { %3209 = vtanh.f32 %v247_v2  ;;  %v2746_v38 = vmul.f32 -1.442695, %v247_v2 }
 0x104   :  { %3211 = vtanh.f32 %v245_v3 }
 0x105   :  { %3213 = vpow2.f32 %v2745_v15 }
 0x106   :  { %3215 = vpow2.f32 %v2743_v16 }
 0x10d   :  { %v3210_v4 = vpop.eup %3209 }
 0x10e   :  { %280 = vrot.lane.b32.xlu0 %v3210_v4, %s3489_s7  ;;  %v3212_v5 = vpop.eup %3211 }
 0x10f   :  { %v3214_v17 = vpop.eup %3213 }
 0x110   :  { %v262_v18 = vadd.f32 1.0, %v3214_v17  ;;  %v3216_v19 = vpop.eup %3215 }
 0x111   :  { %v260_v20 = vadd.f32 1.0, %v3216_v19 }
 0x112   :  { %278 = vrot.lane.b32.xlu0 %v3212_v5, %s3489_s7  ;;  %3217 = vrcp.f32 %v262_v18 }
 0x113   :  { %3219 = vrcp.f32 %v260_v20 }
 0x11c   :  { %v3218_v21 = vpop.eup %3217 }
 0x11d   :  { %v3220_v25 = vpop.eup %3219  ;;  %v275_v29 = vmul.f32 0.0, %v3218_v21 }
 0x11e   :  { %v274_v32 = vmul.f32 0.0, %v3220_v25 }
 0x180   :  { %v281_v23 = vpop.permute.xlu0 %280 }
 0x181   :  { %v285_v24 = vmul.f32 %v3218_v21, %v281_v23 }
 0x183   :  { %290 = vrot.lane.b32.xlu1 %v285_v24, %s3489_s7 }
 0x184   :  { %v279_v27 = vpop.permute.xlu0 %278 }
 0x185   :  { %v284_v28 = vmul.f32 %v3220_v25, %v279_v27 }
 0x187   :  { %288 = vrot.lane.b32.xlu1 %v284_v28, %s3489_s7 }
 0x1f5   :  { %v291_v30 = vpop.permute.xlu1 %290 }
 0x1f6   :  { %v3618_v31 = vadd.f32 %v291_v30, %v275_v29 }
 0x1f8   :  { %3221 = vtanh.f32 %v3618_v31  ;;  %v430_v25 = vrot.slane %v3618_v31, 7 }
 0x1f9   :  { %v289_v33 = vpop.permute.xlu1 %288 }
 0x1fa   :  { %v3621_v34 = vadd.f32 %v289_v33, %v274_v32 }
 0x1fc   :  { %3223 = vtanh.f32 %v3621_v34  ;;  %v429_v30 = vrot.slane %v3621_v34, 7 }
 0x1fd   :  { %3225 = vpow2.f32 %v2746_v38 }
 0x1fe   :  { %3227 = vpow2.f32 %v2744_v40 }
 0x202   :  { %v3222_v36 = vpop.eup %3221 }
 0x203   :  { %302 = vrot.lane.b32.xlu0 %v3222_v36, %s3489_s7 }
 0x206   :  { %v3224_v37 = vpop.eup %3223 }
 0x207   :  { %300 = vrot.lane.b32.xlu1 %v3224_v37, %s3489_s7  ;;  %v3226_v41 = vpop.eup %3225 }
 0x208   :  { %v263_v42 = vadd.f32 1.0, %v3226_v41  ;;  %v3228_v43 = vpop.eup %3227 }
 0x209   :  { %v261_v45 = vadd.f32 1.0, %v3228_v43 }
 0x20a   :  { %3229 = vrcp.f32 %v263_v42 }
 0x20b   :  { %3231 = vrcp.f32 %v261_v45 }
 0x214   :  { %v3230_v46 = vpop.eup %3229 }
 0x215   :  { %v3232_v50 = vpop.eup %3231 }
 0x275   :  { %v303_v47 = vpop.permute.xlu0 %302 }
 0x276   :  { %v307_v49 = vmul.f32 %v3230_v46, %v303_v47 }
 0x278   :  { %310 = vst.msk [vmem:[#allocation2 + $0x8] sm:$0x1] %vm308_vm1, %v307_v49  ;;  %v313_v55 = vrot.slane %v307_v49, 7 }
 0x279   :  { %v301_v54 = vpop.permute.xlu1 %300 }
 0x27a   :  { %v306_v56 = vmul.f32 %v3232_v50, %v301_v54 }
 0x27c   :  { %309 = vst.msk [vmem:[#allocation2] sm:$0x1] %vm308_vm1, %v306_v56  ;;  %v315_v57 = vsel %vm314_vm2, %v313_v55, %v306_v56 }
 0x27d   :  { %2747 = vmatmul.mubr.msk.f32.vlgmr.msra.gmra.mrb[4].mxu0 %vm78_vm0, %v315_v57 }
 0x27e   :  { %3015 = vmatpush1.bf16.msra.mxu0 %v3537_v13  ;;  %701 = vmatprep.mubr.f32.mxu0 %v3488_v0 }
 0x27f   :  { %3017 = vmatprep.subr.bf16.mxu0 %v3541_v22 }
 0x282   :  { %3019 = vmatpush1.bf16.msra.mxu0 %v3543_v26 }
 0x283   :  { %3021 = vmatprep.subr.bf16.mxu0 %v3546_v35 }
 0x286   :  { %3023 = vmatpush1.bf16.msra.mxu0 %v3549_v39 }
 0x287   :  { %3025 = vmatprep.subr.bf16.mxu0 %v3552_v44 }
 0x28a   :  { %3027 = vmatpush1.bf16.msra.mxu0 %v3555_v48 }
 0x28b   :  { %3045 = vmatprep.subr.bf16.mxu0 %v3535_v9 }
 0x350   :  { %v384_v58 = vpop.f32.mrb[4].mxu0 }
 0x351   :  { %v386_v59 = vpop.f32.mrb[5].mxu0  ;;  %v399_v4 = vadd.f32 %v384_v58, %v3610_v10  ;;  %v391_v5 = vrot.slane %v384_v58, 7 }
 0x352   :  { %v392_v60 = vrot.slane %v386_v59, 7  ;;  %v400_v61 = vadd.f32 %v386_v59, %v3600_v1 }
 0x353   :  { %v2750_v7 = vmul.f32 -1.442695, %v399_v4  ;;  %v397_v8 = vadd.f32 %v391_v5, %v3612_v11 }
 0x354   :  { %3233 = vtanh.f32 %v400_v61  ;;  %v398_v62 = vadd.f32 %v392_v60, %v3598_v63  ;;  %v2751_v31 = vmul.f32 -1.442695, %v400_v61 }
 0x355   :  { %v2748_v12 = vmul.f32 -1.442695, %v397_v8 }
 0x356   :  { %3235 = vtanh.f32 %v398_v62  ;;  %v2749_v40 = vmul.f32 -1.442695, %v398_v62 }
 0x357   :  { %3237 = vpow2.f32 %v2750_v7 }
 0x358   :  { %3239 = vpow2.f32 %v2748_v12 }
 0x35e   :  { %v3234_v2 = vpop.eup %3233 }
 0x35f   :  { %439 = vrot.lane.b32.xlu1 %v3234_v2, %s3489_s7 }
 0x360   :  { %v3236_v3 = vpop.eup %3235 }
 0x361   :  { %437 = vrot.lane.b32.xlu0 %v3236_v3, %s3489_s7  ;;  %v3238_v14 = vpop.eup %3237 }
 0x362   :  { %v415_v15 = vadd.f32 1.0, %v3238_v14  ;;  %v3240_v16 = vpop.eup %3239 }
 0x363   :  { %v413_v17 = vadd.f32 1.0, %v3240_v16 }
 0x364   :  { %3241 = vrcp.f32 %v415_v15 }
 0x365   :  { %3243 = vrcp.f32 %v413_v17 }
 0x36e   :  { %v3242_v18 = vpop.eup %3241 }
 0x36f   :  { %v3244_v21 = vpop.eup %3243  ;;  %v434_v27 = vmul.f32 %v3242_v18, %v430_v25 }
 0x370   :  { %v433_v32 = vmul.f32 %v3244_v21, %v429_v30 }
 0x3d1   :  { %v440_v19 = vpop.permute.xlu1 %439 }
 0x3d2   :  { %v444_v20 = vmul.f32 %v3242_v18, %v440_v19 }
 0x3d3   :  { %v438_v23 = vpop.permute.xlu0 %437 }
 0x3d4   :  { %449 = vrot.lane.b32.xlu1 %v444_v20, %s3489_s7  ;;  %v443_v24 = vmul.f32 %v3244_v21, %v438_v23 }
 0x3d6   :  { %447 = vrot.lane.b32.xlu0 %v443_v24, %s3489_s7 }
 0x446   :  { %v450_v28 = vpop.permute.xlu1 %449 }
 0x447   :  { %v3646_v29 = vadd.f32 %v450_v28, %v434_v27 }
 0x448   :  { %v448_v33 = vpop.permute.xlu0 %447 }
 0x449   :  { %3245 = vtanh.f32 %v3646_v29  ;;  %v3650_v36 = vadd.f32 %v448_v33, %v433_v32  ;;  %v590_v33 = vrot.slane %v3646_v29, 7 }
 0x44b   :  { %3247 = vtanh.f32 %v3650_v36  ;;  %v589_v27 = vrot.slane %v3650_v36, 7 }
 0x44c   :  { %3249 = vpow2.f32 %v2751_v31 }
 0x44d   :  { %3251 = vpow2.f32 %v2749_v40 }
 0x453   :  { %v3246_v37 = vpop.eup %3245 }
 0x454   :  { %461 = vrot.lane.b32.xlu1 %v3246_v37, %s3489_s7 }
 0x455   :  { %v3248_v38 = vpop.eup %3247 }
 0x456   :  { %459 = vrot.lane.b32.xlu0 %v3248_v38, %s3489_s7  ;;  %v3250_v41 = vpop.eup %3249 }
 0x457   :  { %v416_v34 = vadd.f32 1.0, %v3250_v41  ;;  %v3252_v42 = vpop.eup %3251 }
 0x458   :  { %v414_v43 = vadd.f32 1.0, %v3252_v42 }
 0x459   :  { %3253 = vrcp.f32 %v416_v34 }
 0x45a   :  { %3255 = vrcp.f32 %v414_v43 }
 0x463   :  { %v3254_v45 = vpop.eup %3253 }
 0x464   :  { %v3256_v49 = vpop.eup %3255 }
 0x4c6   :  { %v462_v46 = vpop.permute.xlu1 %461 }
 0x4c7   :  { %v466_v47 = vmul.f32 %v3254_v45, %v462_v46 }
 0x4c8   :  { %v460_v50 = vpop.permute.xlu0 %459 }
 0x4c9   :  { %469 = vst.msk [vmem:[#allocation2 + $0x8] sm:$0x2] %vm467_vm3, %v466_v47  ;;  %v465_v54 = vmul.f32 %v3256_v49, %v460_v50 }
 0x4cb   :  { %468 = vst.msk [vmem:[#allocation2] sm:$0x2] %vm467_vm3, %v465_v54  ;;  %v472_v55 = vrot.slane %v465_v54, 1 }
 0x4cd   :  { %v473_v56 = vsel %vm314_vm2, %v466_v47, %v472_v55 }
 0x4ce   :  { %2752 = vmatmul.mubr.msk.f32.vlgmr.msra.gmra.mrb[2].mxu1 %vm78_vm0, %v473_v56 }
 0x4cf   :  { %3031 = vmatpush1.bf16.msra.mxu1 %v3537_v13  ;;  %862 = vmatprep.mubr.f32.mxu1 %v3488_v0 }
 0x4d0   :  { %3033 = vmatprep.subr.bf16.mxu1 %v3541_v22 }
 0x4d3   :  { %3035 = vmatpush1.bf16.msra.mxu1 %v3543_v26 }
 0x4d4   :  { %3037 = vmatprep.subr.bf16.mxu1 %v3546_v35 }
 0x4d7   :  { %3039 = vmatpush1.bf16.msra.mxu1 %v3549_v39 }
 0x4d8   :  { %3041 = vmatprep.subr.bf16.mxu1 %v3552_v44 }
 0x4db   :  { %3043 = vmatpush1.bf16.msra.mxu1 %v3555_v48 }
 0x4dc   :  { %3061 = vmatprep.subr.bf16.mxu1 %v3535_v9 }
 0x5a1   :  { %v542_v57 = vpop.f32.mrb[2].mxu1 }
 0x5a2   :  { %v544_v58 = vpop.f32.mrb[3].mxu1  ;;  %v549_v4 = vrot.slane %v542_v57, 6  ;;  %v551_v7 = vrot.slane %v542_v57, 7 }
 0x5a3   :  { %v550_v59 = vrot.slane %v544_v58, 6  ;;  %v552_v60 = vrot.slane %v544_v58, 7 }
 0x5a4   :  { %v557_v5 = vadd.f32 %v549_v4, %v3612_v11  ;;  %v559_v12 = vadd.f32 %v551_v7, %v3610_v10 }
 0x5a5   :  { %v558_v61 = vadd.f32 %v550_v59, %v3598_v63  ;;  %v560_v62 = vadd.f32 %v552_v60, %v3600_v1 }
 0x5a6   :  { %v2753_v8 = vmul.f32 -1.442695, %v557_v5  ;;  %v2755_v14 = vmul.f32 -1.442695, %v559_v12 }
 0x5a7   :  { %3257 = vtanh.f32 %v558_v61  ;;  %v2754_v36 = vmul.f32 -1.442695, %v558_v61  ;;  %v2756_v34 = vmul.f32 -1.442695, %v560_v62 }
 0x5a8   :  { %3259 = vtanh.f32 %v560_v62 }
 0x5a9   :  { %3261 = vpow2.f32 %v2753_v8 }
 0x5aa   :  { %3263 = vpow2.f32 %v2755_v14 }
 0x5b1   :  { %v3258_v2 = vpop.eup %3257 }
 0x5b2   :  { %597 = vrot.lane.b32.xlu0 %v3258_v2, %s3489_s7  ;;  %v3260_v3 = vpop.eup %3259 }
 0x5b3   :  { %599 = vrot.lane.b32.xlu1 %v3260_v3, %s3489_s7  ;;  %v3262_v15 = vpop.eup %3261 }
 0x5b4   :  { %v573_v16 = vadd.f32 1.0, %v3262_v15  ;;  %v3264_v17 = vpop.eup %3263 }
 0x5b5   :  { %v575_v18 = vadd.f32 1.0, %v3264_v17 }
 0x5b6   :  { %3265 = vrcp.f32 %v573_v16 }
 0x5b7   :  { %3267 = vrcp.f32 %v575_v18 }
 0x5c0   :  { %v3266_v19 = vpop.eup %3265 }
 0x5c1   :  { %v3268_v23 = vpop.eup %3267  ;;  %v593_v28 = vmul.f32 %v3266_v19, %v589_v27 }
 0x5c2   :  { %v594_v37 = vmul.f32 %v3268_v23, %v590_v33 }
 0x624   :  { %v598_v20 = vpop.permute.xlu0 %597 }
 0x625   :  { %v603_v21 = vmul.f32 %v3266_v19, %v598_v20  ;;  %v600_v24 = vpop.permute.xlu1 %599 }
 0x626   :  { %v604_v25 = vmul.f32 %v3268_v23, %v600_v24 }
 0x627   :  { %607 = vrot.lane.b32.xlu0 %v603_v21, %s3489_s7 }
 0x628   :  { %609 = vrot.lane.b32.xlu1 %v604_v25, %s3489_s7 }
 0x699   :  { %v608_v30 = vpop.permute.xlu0 %607 }
 0x69a   :  { %v3675_v32 = vadd.f32 %v608_v30, %v593_v28  ;;  %v610_v38 = vpop.permute.xlu1 %609 }
 0x69b   :  { %v3679_v31 = vadd.f32 %v610_v38, %v594_v37 }
 0x69c   :  { %3269 = vtanh.f32 %v3675_v32  ;;  %v750_v28 = vrot.slane %v3675_v32, 7 }
 0x69d   :  { %3271 = vtanh.f32 %v3679_v31  ;;  %v751_v38 = vrot.slane %v3679_v31, 7 }
 0x69e   :  { %3273 = vpow2.f32 %v2754_v36 }
 0x69f   :  { %3275 = vpow2.f32 %v2756_v34 }
 0x6a6   :  { %v3270_v40 = vpop.eup %3269 }
 0x6a7   :  { %619 = vrot.lane.b32.xlu0 %v3270_v40, %s3489_s7  ;;  %v3272_v41 = vpop.eup %3271 }
 0x6a8   :  { %621 = vrot.lane.b32.xlu1 %v3272_v41, %s3489_s7  ;;  %v3274_v42 = vpop.eup %3273 }
 0x6a9   :  { %v574_v29 = vadd.f32 1.0, %v3274_v42  ;;  %v3276_v43 = vpop.eup %3275 }
 0x6aa   :  { %v576_v45 = vadd.f32 1.0, %v3276_v43 }
 0x6ab   :  { %3277 = vrcp.f32 %v574_v29 }
 0x6ac   :  { %3279 = vrcp.f32 %v576_v45 }
 0x6b5   :  { %v3278_v46 = vpop.eup %3277 }
 0x6b6   :  { %v3280_v50 = vpop.eup %3279 }
 0x719   :  { %v620_v47 = vpop.permute.xlu0 %619 }
 0x71a   :  { %v625_v49 = vmul.f32 %v3278_v46, %v620_v47  ;;  %v622_v54 = vpop.permute.xlu1 %621 }
 0x71b   :  { %v626_v55 = vmul.f32 %v3280_v50, %v622_v54 }
 0x71c   :  { %628 = vst.msk [vmem:[#allocation2] sm:$0x4] %vm627_vm4, %v625_v49  ;;  %v632_v56 = vrot.slane %v625_v49, 2 }
 0x71d   :  { %629 = vst.msk [vmem:[#allocation2 + $0x8] sm:$0x4] %vm627_vm4, %v626_v55  ;;  %v633_v57 = vrot.slane %v626_v55, 1 }
 0x71f   :  { %v634_v58 = vsel %vm314_vm2, %v633_v57, %v632_v56 }
 0x720   :  { %2757 = vmatmul.mubr.msk.f32.vlgmr.msra.gmra.mrb[6].mxu0 %vm78_vm0, %v634_v58 }
 0x721   :  { %3047 = vmatpush1.bf16.msra.mxu0 %v3537_v13  ;;  %1023 = vmatprep.mubr.f32.mxu0 %v3488_v0 }
 0x722   :  { %3049 = vmatprep.subr.bf16.mxu0 %v3541_v22 }
 0x725   :  { %3051 = vmatpush1.bf16.msra.mxu0 %v3543_v26 }
 0x726   :  { %3053 = vmatprep.subr.bf16.mxu0 %v3546_v35 }
 0x729   :  { %3055 = vmatpush1.bf16.msra.mxu0 %v3549_v39 }
 0x72a   :  { %3057 = vmatprep.subr.bf16.mxu0 %v3552_v44 }
 0x72d   :  { %3059 = vmatpush1.bf16.msra.mxu0 %v3555_v48 }
 0x72e   :  { %3077 = vmatprep.subr.bf16.mxu0 %v3535_v9 }
 0x7f3   :  { %v703_v59 = vpop.f32.mrb[6].mxu0 }
 0x7f4   :  { %v705_v60 = vpop.f32.mrb[7].mxu0  ;;  %v710_v7 = vrot.slane %v703_v59, 5  ;;  %v712_v9 = vrot.slane %v703_v59, 6 }
 0x7f5   :  { %v711_v61 = vrot.slane %v705_v60, 5  ;;  %v713_v62 = vrot.slane %v705_v60, 6 }
 0x7f6   :  { %v718_v8 = vadd.f32 %v710_v7, %v3612_v11  ;;  %v720_v14 = vadd.f32 %v712_v9, %v3610_v10 }
 0x7f7   :  { %v719_v2 = vadd.f32 %v711_v61, %v3598_v63  ;;  %v721_v3 = vadd.f32 %v713_v62, %v3600_v1 }
 0x7f8   :  { %v2758_v12 = vmul.f32 -1.442695, %v718_v8  ;;  %v2760_v15 = vmul.f32 -1.442695, %v720_v14 }
 0x7f9   :  { %3281 = vtanh.f32 %v719_v2  ;;  %v2759_v32 = vmul.f32 -1.442695, %v719_v2  ;;  %v2761_v29 = vmul.f32 -1.442695, %v721_v3 }
 0x7fa   :  { %3283 = vtanh.f32 %v721_v3 }
 0x7fb   :  { %3285 = vpow2.f32 %v2758_v12 }
 0x7fc   :  { %3287 = vpow2.f32 %v2760_v15 }
 0x803   :  { %v3282_v4 = vpop.eup %3281 }
 0x804   :  { %758 = vrot.lane.b32.xlu0 %v3282_v4, %s3489_s7  ;;  %v3284_v5 = vpop.eup %3283 }
 0x805   :  { %760 = vrot.lane.b32.xlu1 %v3284_v5, %s3489_s7  ;;  %v3286_v16 = vpop.eup %3285 }
 0x806   :  { %v734_v17 = vadd.f32 1.0, %v3286_v16  ;;  %v3288_v18 = vpop.eup %3287 }
 0x807   :  { %v736_v19 = vadd.f32 1.0, %v3288_v18 }
 0x808   :  { %3289 = vrcp.f32 %v734_v17 }
 0x809   :  { %3291 = vrcp.f32 %v736_v19 }
 0x812   :  { %v3290_v20 = vpop.eup %3289 }
 0x813   :  { %v3292_v24 = vpop.eup %3291  ;;  %v754_v30 = vmul.f32 %v3290_v20, %v750_v28 }
 0x814   :  { %v755_v40 = vmul.f32 %v3292_v24, %v751_v38 }
 0x876   :  { %v759_v21 = vpop.permute.xlu0 %758 }
 0x877   :  { %v764_v23 = vmul.f32 %v3290_v20, %v759_v21  ;;  %v761_v25 = vpop.permute.xlu1 %760 }
 0x878   :  { %v765_v27 = vmul.f32 %v3292_v24, %v761_v25 }
 0x879   :  { %768 = vrot.lane.b32.xlu0 %v764_v23, %s3489_s7 }
 0x87a   :  { %770 = vrot.lane.b32.xlu1 %v765_v27, %s3489_s7 }
 0x8eb   :  { %v769_v33 = vpop.permute.xlu0 %768 }
 0x8ec   :  { %v3704_v37 = vadd.f32 %v769_v33, %v754_v30  ;;  %v771_v41 = vpop.permute.xlu1 %770 }
 0x8ed   :  { %v3708_v36 = vadd.f32 %v771_v41, %v755_v40 }
 0x8ee   :  { %3293 = vtanh.f32 %v3704_v37  ;;  %v911_v30 = vrot.slane %v3704_v37, 7 }
 0x8ef   :  { %3295 = vtanh.f32 %v3708_v36  ;;  %v912_v41 = vrot.slane %v3708_v36, 7 }
 0x8f0   :  { %3297 = vpow2.f32 %v2759_v32 }
 0x8f1   :  { %3299 = vpow2.f32 %v2761_v29 }
 0x8f8   :  { %v3294_v34 = vpop.eup %3293 }
 0x8f9   :  { %780 = vrot.lane.b32.xlu0 %v3294_v34, %s3489_s7  ;;  %v3296_v42 = vpop.eup %3295 }
 0x8fa   :  { %782 = vrot.lane.b32.xlu1 %v3296_v42, %s3489_s7  ;;  %v3298_v43 = vpop.eup %3297 }
 0x8fb   :  { %v735_v31 = vadd.f32 1.0, %v3298_v43  ;;  %v3300_v45 = vpop.eup %3299 }
 0x8fc   :  { %v737_v46 = vadd.f32 1.0, %v3300_v45 }
 0x8fd   :  { %3301 = vrcp.f32 %v735_v31 }
 0x8fe   :  { %3303 = vrcp.f32 %v737_v46 }
 0x907   :  { %v3302_v47 = vpop.eup %3301 }
 0x908   :  { %v3304_v54 = vpop.eup %3303 }
 0x96b   :  { %v781_v49 = vpop.permute.xlu0 %780 }
 0x96c   :  { %v786_v50 = vmul.f32 %v3302_v47, %v781_v49  ;;  %v783_v55 = vpop.permute.xlu1 %782 }
 0x96d   :  { %v787_v56 = vmul.f32 %v3304_v54, %v783_v55 }
 0x96e   :  { %789 = vst.msk [vmem:[#allocation2] sm:$0x8] %vm788_vm5, %v786_v50  ;;  %v793_v57 = vrot.slane %v786_v50, 3 }
 0x96f   :  { %790 = vst.msk [vmem:[#allocation2 + $0x8] sm:$0x8] %vm788_vm5, %v787_v56  ;;  %v794_v58 = vrot.slane %v787_v56, 2 }
 0x971   :  { %v795_v59 = vsel %vm314_vm2, %v794_v58, %v793_v57 }
 0x972   :  { %2762 = vmatmul.mubr.msk.f32.vlgmr.msra.gmra.mrb[4].mxu1 %vm78_vm0, %v795_v59 }
 0x973   :  { %3063 = vmatpush1.bf16.msra.mxu1 %v3537_v13  ;;  %1184 = vmatprep.mubr.f32.mxu1 %v3488_v0 }
 0x974   :  { %3065 = vmatprep.subr.bf16.mxu1 %v3541_v22 }
 0x977   :  { %3067 = vmatpush1.bf16.msra.mxu1 %v3543_v26 }
 0x978   :  { %3069 = vmatprep.subr.bf16.mxu1 %v3546_v35 }
 0x97b   :  { %3071 = vmatpush1.bf16.msra.mxu1 %v3549_v39 }
 0x97c   :  { %3073 = vmatprep.subr.bf16.mxu1 %v3552_v44 }
 0x97f   :  { %3075 = vmatpush1.bf16.msra.mxu1 %v3555_v48 }
 0xa45   :  { %v864_v60 = vpop.f32.mrb[4].mxu1 }
 0xa46   :  { %v866_v61 = vpop.f32.mrb[5].mxu1  ;;  %v871_v8 = vrot.slane %v864_v60, 4  ;;  %v873_v12 = vrot.slane %v864_v60, 5 }
 0xa47   :  { %v872_v62 = vrot.slane %v866_v61, 4  ;;  %v874_v2 = vrot.slane %v866_v61, 5 }
 0xa48   :  { %v879_v9 = vadd.f32 %v871_v8, %v3612_v11  ;;  %v881_v15 = vadd.f32 %v873_v12, %v3610_v10 }
 0xa49   :  { %v880_v3 = vadd.f32 %v872_v62, %v3598_v63  ;;  %v882_v4 = vadd.f32 %v874_v2, %v3600_v1 }
 0xa4a   :  { %v2763_v14 = vmul.f32 -1.442695, %v879_v9  ;;  %v2765_v16 = vmul.f32 -1.442695, %v881_v15 }
 0xa4b   :  { %3305 = vtanh.f32 %v880_v3  ;;  %v2764_v37 = vmul.f32 -1.442695, %v880_v3  ;;  %v2766_v31 = vmul.f32 -1.442695, %v882_v4 }
 0xa4c   :  { %3307 = vtanh.f32 %v882_v4 }
 0xa4d   :  { %3309 = vpow2.f32 %v2763_v14 }
 0xa4e   :  { %3311 = vpow2.f32 %v2765_v16 }
 0xa55   :  { %v3306_v5 = vpop.eup %3305 }
 0xa56   :  { %919 = vrot.lane.b32.xlu0 %v3306_v5, %s3489_s7  ;;  %v3308_v7 = vpop.eup %3307 }
 0xa57   :  { %921 = vrot.lane.b32.xlu1 %v3308_v7, %s3489_s7  ;;  %v3310_v17 = vpop.eup %3309 }
 0xa58   :  { %v895_v18 = vadd.f32 1.0, %v3310_v17  ;;  %v3312_v19 = vpop.eup %3311 }
 0xa59   :  { %v897_v20 = vadd.f32 1.0, %v3312_v19 }
 0xa5a   :  { %3313 = vrcp.f32 %v895_v18 }
 0xa5b   :  { %3315 = vrcp.f32 %v897_v20 }
 0xa64   :  { %v3314_v21 = vpop.eup %3313 }
 0xa65   :  { %v3316_v25 = vpop.eup %3315  ;;  %v915_v33 = vmul.f32 %v3314_v21, %v911_v30 }
 0xa66   :  { %v916_v34 = vmul.f32 %v3316_v25, %v912_v41 }
 0xac8   :  { %v920_v23 = vpop.permute.xlu0 %919 }
 0xac9   :  { %v925_v24 = vmul.f32 %v3314_v21, %v920_v23  ;;  %v922_v27 = vpop.permute.xlu1 %921 }
 0xaca   :  { %v926_v28 = vmul.f32 %v3316_v25, %v922_v27 }
 0xacb   :  { %929 = vrot.lane.b32.xlu0 %v925_v24, %s3489_s7 }
 0xacc   :  { %931 = vrot.lane.b32.xlu1 %v926_v28, %s3489_s7 }
 0xb3d   :  { %v930_v38 = vpop.permute.xlu0 %929 }
 0xb3e   :  { %v3732_v40 = vadd.f32 %v930_v38, %v915_v33  ;;  %v932_v42 = vpop.permute.xlu1 %931 }
 0xb3f   :  { %v3736_v32 = vadd.f32 %v932_v42, %v916_v34 }
 0xb40   :  { %3317 = vtanh.f32 %v3732_v40  ;;  %v1072_v21 = vrot.slane %v3732_v40, 7 }
 0xb41   :  { %3319 = vtanh.f32 %v3736_v32  ;;  %v1073_v27 = vrot.slane %v3736_v32, 7 }
 0xb42   :  { %3321 = vpow2.f32 %v2764_v37 }
 0xb43   :  { %3323 = vpow2.f32 %v2766_v31 }
 0xb4a   :  { %v3318_v29 = vpop.eup %3317 }
 0xb4b   :  { %941 = vrot.lane.b32.xlu0 %v3318_v29, %s3489_s7  ;;  %v3320_v43 = vpop.eup %3319 }
 0xb4c   :  { %943 = vrot.lane.b32.xlu1 %v3320_v43, %s3489_s7  ;;  %v3322_v45 = vpop.eup %3321 }
 0xb4d   :  { %v896_v36 = vadd.f32 1.0, %v3322_v45  ;;  %v3324_v46 = vpop.eup %3323 }
 0xb4e   :  { %v898_v47 = vadd.f32 1.0, %v3324_v46 }
 0xb4f   :  { %3325 = vrcp.f32 %v896_v36 }
 0xb50   :  { %3327 = vrcp.f32 %v898_v47 }
 0xb59   :  { %v3326_v49 = vpop.eup %3325 }
 0xb5a   :  { %v3328_v55 = vpop.eup %3327 }
 0xbbd   :  { %v942_v50 = vpop.permute.xlu0 %941 }
 0xbbe   :  { %v947_v54 = vmul.f32 %v3326_v49, %v942_v50  ;;  %v944_v56 = vpop.permute.xlu1 %943 }
 0xbbf   :  { %v948_v57 = vmul.f32 %v3328_v55, %v944_v56 }
 0xbc0   :  { %950 = vst.msk [vmem:[#allocation2] sm:$0x10] %vm949_vm6, %v947_v54  ;;  %v954_v58 = vrot.slane %v947_v54, 4 }
 0xbc1   :  { %951 = vst.msk [vmem:[#allocation2 + $0x8] sm:$0x10] %vm949_vm6, %v948_v57  ;;  %v955_v59 = vrot.slane %v948_v57, 3 }
 0xbc3   :  { %v956_v60 = vsel %vm314_vm2, %v955_v59, %v954_v58 }
 0xbc4   :  { %2767 = vmatmul.mubr.msk.f32.vlgmr.msra.gmra.mrb[8].mxu0 %vm78_vm0, %v956_v60 }
 0xbc5   :  { %3079 = vmatpush1.bf16.msra.mxu0 %v3537_v13  ;;  %1345 = vmatprep.mubr.f32.mxu0 %v3488_v0 }
 0xbc6   :  { %3081 = vmatprep.subr.bf16.mxu0 %v3541_v22 }
 0xbc9   :  { %3083 = vmatpush1.bf16.msra.mxu0 %v3543_v26 }
 0xbca   :  { %3085 = vmatprep.subr.bf16.mxu0 %v3546_v35 }
 0xbcd   :  { %3087 = vmatpush1.bf16.msra.mxu0 %v3549_v39 }
 0xbce   :  { %3089 = vmatprep.subr.bf16.mxu0 %v3552_v44 }
 0xbd1   :  { %3091 = vmatpush1.bf16.msra.mxu0 %v3555_v48 }
 0xbd2   :  { %2851 = vmatprep.subr.mxu0 %v3488_v0 }
 0xc97   :  { %v1025_v61 = vpop.f32.mrb[8].mxu0 }
 0xc98   :  { %v1027_v62 = vpop.f32.mrb[9].mxu0  ;;  %v1032_v39 = vrot.slane %v1025_v61, 3  ;;  %v1034_v48 = vrot.slane %v1025_v61, 4 }
 0xc99   :  { %v1033_v2 = vrot.slane %v1027_v62, 3  ;;  %v1035_v13 = vrot.slane %v1027_v62, 4 }
 0xc9a   :  { %v1040_v44 = vadd.f32 %v1032_v39, %v3612_v11  ;;  %v1042_v5 = vadd.f32 %v1034_v48, %v3610_v10 }
 0xc9b   :  { %v1041_v3 = vadd.f32 %v1033_v2, %v3598_v63  ;;  %v1043_v22 = vadd.f32 %v1035_v13, %v3600_v1 }
 0xc9c   :  { %v2768_v4 = vmul.f32 -1.442695, %v1040_v44  ;;  %v2770_v7 = vmul.f32 -1.442695, %v1042_v5 }
 0xc9d   :  { %3329 = vtanh.f32 %v1041_v3  ;;  %v2769_v40 = vmul.f32 -1.442695, %v1041_v3  ;;  %v2771_v34 = vmul.f32 -1.442695, %v1043_v22 }
 0xc9e   :  { %3331 = vtanh.f32 %v1043_v22 }
 0xc9f   :  { %3333 = vpow2.f32 %v2768_v4 }
 0xca0   :  { %3335 = vpow2.f32 %v2770_v7 }
 0xca7   :  { %v3330_v26 = vpop.eup %3329 }
 0xca8   :  { %1080 = vrot.lane.b32.xlu0 %v3330_v26, %s3489_s7  ;;  %v3332_v35 = vpop.eup %3331 }
 0xca9   :  { %1082 = vrot.lane.b32.xlu1 %v3332_v35, %s3489_s7  ;;  %v3334_v8 = vpop.eup %3333 }
 0xcaa   :  { %v1056_v9 = vadd.f32 1.0, %v3334_v8  ;;  %v3336_v12 = vpop.eup %3335 }
 0xcab   :  { %v1058_v14 = vadd.f32 1.0, %v3336_v12 }
 0xcac   :  { %3337 = vrcp.f32 %v1056_v9 }
 0xcad   :  { %3339 = vrcp.f32 %v1058_v14 }
 0xcb6   :  { %v3338_v15 = vpop.eup %3337 }
 0xcb7   :  { %v3340_v18 = vpop.eup %3339  ;;  %v1076_v23 = vmul.f32 %v3338_v15, %v1072_v21 }
 0xcb8   :  { %v1077_v28 = vmul.f32 %v3340_v18, %v1073_v27 }
 0xd1a   :  { %v1081_v16 = vpop.permute.xlu0 %1080 }
 0xd1b   :  { %v1086_v17 = vmul.f32 %v3338_v15, %v1081_v16  ;;  %v1083_v19 = vpop.permute.xlu1 %1082 }
 0xd1c   :  { %v1087_v20 = vmul.f32 %v3340_v18, %v1083_v19 }
 0xd1d   :  { %1090 = vrot.lane.b32.xlu0 %v1086_v17, %s3489_s7 }
 0xd1e   :  { %1092 = vrot.lane.b32.xlu1 %v1087_v20, %s3489_s7 }
 0xd8f   :  { %v1091_v24 = vpop.permute.xlu0 %1090 }
 0xd90   :  { %v3761_v25 = vadd.f32 %v1091_v24, %v1076_v23  ;;  %v1093_v30 = vpop.permute.xlu1 %1092 }
 0xd91   :  { %v3765_v33 = vadd.f32 %v1093_v30, %v1077_v28 }
 0xd92   :  { %3341 = vtanh.f32 %v3761_v25  ;;  %v1233_v15 = vrot.slane %v3761_v25, 7 }
 0xd93   :  { %3343 = vtanh.f32 %v3765_v33  ;;  %v1234_v19 = vrot.slane %v3765_v33, 7 }
 0xd94   :  { %3345 = vpow2.f32 %v2769_v40 }
 0xd95   :  { %3347 = vpow2.f32 %v2771_v34 }
 0xd9c   :  { %v3342_v38 = vpop.eup %3341 }
 0xd9d   :  { %1102 = vrot.lane.b32.xlu0 %v3342_v38, %s3489_s7  ;;  %v3344_v41 = vpop.eup %3343 }
 0xd9e   :  { %1104 = vrot.lane.b32.xlu1 %v3344_v41, %s3489_s7  ;;  %v3346_v42 = vpop.eup %3345 }
 0xd9f   :  { %v1057_v32 = vadd.f32 1.0, %v3346_v42  ;;  %v3348_v29 = vpop.eup %3347 }
 0xda0   :  { %v1059_v43 = vadd.f32 1.0, %v3348_v29 }
 0xda1   :  { %3349 = vrcp.f32 %v1057_v32 }
 0xda2   :  { %3351 = vrcp.f32 %v1059_v43 }
 0xdab   :  { %v3350_v37 = vpop.eup %3349 }
 0xdac   :  { %v3352_v36 = vpop.eup %3351 }
 0xe0f   :  { %v1103_v31 = vpop.permute.xlu0 %1102 }
 0xe10   :  { %v1108_v45 = vmul.f32 %v3350_v37, %v1103_v31  ;;  %v1105_v46 = vpop.permute.xlu1 %1104 }
 0xe11   :  { %v1109_v47 = vmul.f32 %v3352_v36, %v1105_v46 }
 0xe12   :  { %1111 = vst.msk [vmem:[#allocation2] sm:$0x20] %vm1110_vm7, %v1108_v45  ;;  %v1115_v49 = vrot.slane %v1108_v45, 5 }
 0xe13   :  { %1112 = vst.msk [vmem:[#allocation2 + $0x8] sm:$0x20] %vm1110_vm7, %v1109_v47  ;;  %v1116_v50 = vrot.slane %v1109_v47, 4 }
 0xe15   :  { %v1117_v54 = vsel %vm314_vm2, %v1116_v50, %v1115_v49 }
 0xe16   :  { %2772 = vmatmul.mubr.msk.f32.vlgmr.msra.gmra.mrb[6].mxu1 %vm78_vm0, %v1117_v54 }
 0xe17   :  { %1549 = vmatprep.mubr.f32.mxu1 %v3488_v0 }
 0xee9   :  { %v1186_v55 = vpop.f32.mrb[6].mxu1 }
 0xeea   :  { %v1188_v56 = vpop.f32.mrb[7].mxu1  ;;  %v1193_v2 = vrot.slane %v1186_v55, 2  ;;  %v1195_v3 = vrot.slane %v1186_v55, 3 }
 0xeeb   :  { %v1194_v57 = vrot.slane %v1188_v56, 2  ;;  %v1196_v58 = vrot.slane %v1188_v56, 3 }
 0xeec   :  { %v1201_v13 = vadd.f32 %v1193_v2, %v3612_v11  ;;  %v1203_v26 = vadd.f32 %v1195_v3, %v3610_v10 }
 0xeed   :  { %v1202_v59 = vadd.f32 %v1194_v57, %v3598_v63  ;;  %v1204_v60 = vadd.f32 %v1196_v58, %v3600_v1 }
 0xeee   :  { %v2773_v22 = vmul.f32 -1.442695, %v1201_v13  ;;  %v2775_v35 = vmul.f32 -1.442695, %v1203_v26 }
 0xeef   :  { %3353 = vtanh.f32 %v1202_v59  ;;  %v2774_v25 = vmul.f32 -1.442695, %v1202_v59  ;;  %v2776_v28 = vmul.f32 -1.442695, %v1204_v60 }
 0xef0   :  { %3355 = vtanh.f32 %v1204_v60 }
 0xef1   :  { %3357 = vpow2.f32 %v2773_v22 }
 0xef2   :  { %3359 = vpow2.f32 %v2775_v35 }
 0xef9   :  { %v3354_v61 = vpop.eup %3353 }
 0xefa   :  { %1241 = vrot.lane.b32.xlu0 %v3354_v61, %s3489_s7  ;;  %v3356_v62 = vpop.eup %3355 }
 0xefb   :  { %1243 = vrot.lane.b32.xlu1 %v3356_v62, %s3489_s7  ;;  %v3358_v39 = vpop.eup %3357 }
 0xefc   :  { %v1217_v44 = vadd.f32 1.0, %v3358_v39  ;;  %v3360_v48 = vpop.eup %3359 }
 0xefd   :  { %v1219_v4 = vadd.f32 1.0, %v3360_v48  ;;  %v1437_v48 = vld [vmem:[#allocation3 + $0x20] sm:$0xff] }
 0xefe   :  { %3361 = vrcp.f32 %v1217_v44  ;;  %v3809_v44 = vld [vmem:[#allocation3 + $0x60] sm:$0xff] }
 0xeff   :  { %3363 = vrcp.f32 %v1219_v4 }
 0xf08   :  { %v3362_v5 = vpop.eup %3361 }
 0xf09   :  { %v3364_v9 = vpop.eup %3363  ;;  %v1237_v16 = vmul.f32 %v3362_v5, %v1233_v15  ;;  %v1443_v15 = vld [vmem:[#allocation3 + $0xc8] sm:$0xff] }
 0xf0a   :  { %v1238_v20 = vmul.f32 %v3364_v9, %v1234_v19 }
 0xf6c   :  { %v1242_v7 = vpop.permute.xlu0 %1241 }
 0xf6d   :  { %v1247_v8 = vmul.f32 %v3362_v5, %v1242_v7  ;;  %v1244_v12 = vpop.permute.xlu1 %1243  ;;  %v1439_v5 = vld [vmem:[#allocation3 + $0x58] sm:$0xff] }
 0xf6e   :  { %v1248_v14 = vmul.f32 %v3364_v9, %v1244_v12  ;;  %v3813_v7 = vld [vmem:[#allocation3 + $0x98] sm:$0xff]  ;;  %v3094_v9 = vpack.c.bf16 %v1439_v5, %v1437_v48 }
 0xf6f   :  { %1251 = vrot.lane.b32.xlu0 %v1247_v8, %s3489_s7  ;;  %v3815_v8 = vld [vmem:[#allocation3 + $0xd0] sm:$0xff] }
 0xf70   :  { %1253 = vrot.lane.b32.xlu1 %v1248_v14, %s3489_s7  ;;  %v3096_v12 = vpack.c.bf16 %v3815_v8, %v3813_v7  ;;  %v1441_v14 = vld [vmem:[#allocation3 + $0x90] sm:$0xff] }
 0xfe1   :  { %v1252_v17 = vpop.permute.xlu0 %1251 }
 0xfe2   :  { %v3782_v18 = vadd.f32 %v1252_v17, %v1237_v16  ;;  %v1254_v21 = vpop.permute.xlu1 %1253  ;;  %v3098_v16 = vpack.c.bf16 %v1443_v15, %v1441_v14 }
 0xfe3   :  { %v3786_v23 = vadd.f32 %v1254_v21, %v1238_v20 }
 0xfe4   :  { %3365 = vtanh.f32 %v3782_v18  ;;  %v1394_v17 = vrot.slane %v3782_v18, 7  ;;  %v3827_v18 = vld [vmem:[#allocation3 + $0x178] sm:$0xff] }
 0xfe5   :  { %3367 = vtanh.f32 %v3786_v23 }
 0xfe6   :  { %3369 = vpow2.f32 %v2774_v25 }
 0xfe7   :  { %3371 = vpow2.f32 %v2776_v28  ;;  %v3821_v28 = vld [vmem:[#allocation3 + $0x108] sm:$0xff] }
 0xfee   :  { %v3366_v24 = vpop.eup %3365 }
 0xfef   :  { %1263 = vrot.lane.b32.xlu0 %v3366_v24, %s3489_s7  ;;  %v3368_v27 = vpop.eup %3367  ;;  %v1395_v24 = vrot.slane %v3786_v23, 7  ;;  %v1449_v23 = vld [vmem:[#allocation3 + $0x170] sm:$0xff] }
 0xff0   :  { %1265 = vrot.lane.b32.xlu1 %v3368_v27, %s3489_s7  ;;  %v3370_v30 = vpop.eup %3369 }
 0xff1   :  { %v1218_v33 = vadd.f32 1.0, %v3370_v30  ;;  %v3372_v38 = vpop.eup %3371  ;;  %v3823_v30 = vld [vmem:[#allocation3 + $0x140] sm:$0xff] }
 0xff2   :  { %v1220_v41 = vadd.f32 1.0, %v3372_v38  ;;  %v3100_v38 = vpack.c.bf16 %v3823_v30, %v3821_v28 }
 0xff3   :  { %3373 = vrcp.f32 %v1218_v33 }
 0xff4   :  { %3375 = vrcp.f32 %v1220_v41  ;;  %v1445_v41 = vld [vmem:[#allocation3 + $0x100] sm:$0xff] }
 0xffd   :  { %v3374_v40 = vpop.eup %3373 }
 0xffe   :  { %v3376_v32 = vpop.eup %3375 }
0x1061   :  { %v1264_v34 = vpop.permute.xlu0 %1263 }
0x1062   :  { %v1269_v42 = vmul.f32 %v3374_v40, %v1264_v34  ;;  %v1266_v29 = vpop.permute.xlu1 %1265  ;;  %v1447_v40 = vld [vmem:[#allocation3 + $0x138] sm:$0xff] }
0x1063   :  { %v1270_v43 = vmul.f32 %v3376_v32, %v1266_v29  ;;  %v3102_v34 = vpack.c.bf16 %v1447_v40, %v1445_v41  ;;  %v1451_v29 = vld [vmem:[#allocation3 + $0x1a8] sm:$0xff] }
0x1064   :  { %1272 = vst.msk [vmem:[#allocation2] sm:$0x40] %vm1271_vm8, %v1269_v42  ;;  %v1276_v37 = vrot.slane %v1269_v42, 6  ;;  %v3829_v42 = vld [vmem:[#allocation3 + $0x1b0] sm:$0xff] }
0x1065   :  { %1273 = vst.msk [vmem:[#allocation2 + $0x8] sm:$0x40] %vm1271_vm8, %v1270_v43  ;;  %v1277_v31 = vrot.slane %v1270_v43, 5  ;;  %v3104_v32 = vpack.c.bf16 %v3829_v42, %v3827_v18  ;;  %v3106_v43 = vpack.c.bf16 %v1451_v29, %v1449_v23 }
0x1067   :  { %v1278_v45 = vsel %vm314_vm2, %v1277_v31, %v1276_v37 }
0x1068   :  { %2777 = vmatmul.mubr.msk.f32.vlgmr.msra.gmra.mrb[10].mxu0 %vm78_vm0, %v1278_v45 }
0x1069   :  { %2853 = vmatprep.mubr.msk.f32.mxu0 %vm3490_vm10, %v3488_v0 }
0x113b   :  { %v1347_v36 = vpop.f32.mrb[10].mxu0 }
0x113c   :  { %v1349_v46 = vpop.f32.mrb[11].mxu0  ;;  %v1354_v57 = vrot.slane %v1347_v36, 1  ;;  %v1356_v59 = vrot.slane %v1347_v36, 2 }
0x113d   :  { %v1355_v47 = vrot.slane %v1349_v46, 1  ;;  %v1357_v49 = vrot.slane %v1349_v46, 2 }
0x113e   :  { %v1362_v58 = vadd.f32 %v1354_v57, %v3612_v11 }
0x113f   :  { %v3794_v50 = vadd.f32 %v1355_v47, %v3598_v63  ;;  %v3798_v54 = vadd.f32 %v1357_v49, %v3600_v1  ;;  %v1364_v63 = vadd.f32 %v1356_v59, %v3610_v10  ;;  %v3807_v10 = vld [vmem:[#allocation3 + $0x28] sm:$0xff] }
0x1140   :  { %v2778_v60 = vmul.f32 -1.442695, %v1362_v58  ;;  %v3092_v4 = vpack.c.bf16 %v3809_v44, %v3807_v10 }
0x1141   :  { %3377 = vtanh.f32 %v3794_v50  ;;  %v2780_v61 = vmul.f32 -1.442695, %v1364_v63  ;;  %v2779_v45 = vmul.f32 -1.442695, %v3794_v50  ;;  %v2781_v36 = vmul.f32 -1.442695, %v3798_v54 }
0x1142   :  { %3379 = vtanh.f32 %v3798_v54  ;;  %3093 = vmatprep.subr.bf16.mxu1 %v3092_v4  ;;  %v3491_v4 = vmov 1966171168  }
0x1143   :  { %3381 = vpow2.f32 %v2778_v60  ;;  %3095 = vmatpush1.bf16.msra.mxu1 %v3094_v9  ;;  %v1566_v5 = vunpack.c.l.s4 %v3491_v4 }
0x1144   :  { %3383 = vpow2.f32 %v2780_v61  ;;  %3097 = vmatprep.subr.bf16.mxu1 %v3096_v12  ;;  %v2782_v61 = vld [vmem:[%s4012_s3 + $0x1] ss:$8 sm:$0x3] }
0x1145   :  { %v1567_v9 = vunpack.c.0.s8 %v1566_v5  ;;  %v1562_v12 = vld [vmem:[%s4010_s1] sm:$0x3]  ;;  %s3492_s1 = smov 32  }
0x1146   :  { %v1563_v14 = vsub.f32 1.0, %v1562_v12 }
0x1147   :  { %3099 = vmatpush1.bf16.msra.mxu1 %v3098_v16  ;;  %v1570_v15 = vsub.s32 %v1567_v9, %v3590_v52 }
0x1148   :  { %3101 = vmatprep.subr.bf16.mxu1 %v3100_v38 }
0x1149   :  { %v1571_v16 = vrot.slane %v1563_v14, %v1570_v15 }
0x114b   :  { %v3378_v55 = vpop.eup %3377  ;;  %3103 = vmatpush1.bf16.msra.mxu1 %v3102_v34 }
0x114c   :  { %1402 = vrot.lane.b32.xlu0 %v3378_v55, %s3489_s7  ;;  %v3380_v56 = vpop.eup %3379  ;;  %3105 = vmatprep.subr.bf16.mxu1 %v3104_v32 }
0x114d   :  { %1404 = vrot.lane.b32.xlu1 %v3380_v56, %s3489_s7  ;;  %v3382_v1 = vpop.eup %3381 }
0x114e   :  { %v1378_v62 = vadd.f32 1.0, %v3382_v1  ;;  %v3384_v2 = vpop.eup %3383  ;;  %v1472_v1 = vrot.slane %v2782_v61, %v3607_v6 }
0x114f   :  { %v1380_v13 = vadd.f32 1.0, %v3384_v2  ;;  %3107 = vmatpush1.bf16.msra.mxu1 %v3106_v43 }
0x1150   :  { %3385 = vrcp.f32 %v1378_v62  ;;  %2871 = vmatprep.subr.mxu1 %v3488_v0 }
0x1151   :  { %3387 = vrcp.f32 %v1380_v13 }
0x115a   :  { %v3386_v3 = vpop.eup %3385 }
0x115b   :  { %v3388_v35 = vpop.eup %3387  ;;  %v1398_v19 = vmul.f32 %v3386_v3, %v1394_v17  ;;  %v1579_v17 = vrot.slane %v1571_v16, %v1570_v15 }
0x115c   :  { %v1399_v27 = vmul.f32 %v3388_v35, %v1395_v24 }
0x11be   :  { %v1403_v22 = vpop.permute.xlu0 %1402 }
0x11bf   :  { %v1408_v26 = vmul.f32 %v3386_v3, %v1403_v22  ;;  %v1405_v11 = vpop.permute.xlu1 %1404  ;;  %v1476_v3 = vrot.slane %v2782_v61, %v74_v53 }
0x11c0   :  { %v1409_v39 = vmul.f32 %v3388_v35, %v1405_v11 }
0x11c1   :  { %1412 = vrot.lane.b32.xlu0 %v1408_v26, %s3489_s7 }
0x11c2   :  { %1414 = vrot.lane.b32.xlu1 %v1409_v39, %s3489_s7 }
0x1233   :  { %v1413_v20 = vpop.permute.xlu0 %1412 }
0x1234   :  { %v1418_v21 = vadd.f32 %v1413_v20, %v1398_v19  ;;  %v1415_v25 = vpop.permute.xlu1 %1414  ;;  %v1572_v19 = vcombine.high %v1571_v16, %v1571_v16  ;;  %v1589_v20 = vmul.f32 -10000.0, %v1579_v17 }
0x1235   :  { %v1419_v33 = vadd.f32 %v1415_v25, %v1399_v27 }
0x1236   :  { %3389 = vtanh.f32 %v1418_v21  ;;  %v1586_v21 = vrot.slane %v1572_v19, %v1570_v15  ;;  %v3884_v24 = vrot.slane %v1589_v20, %v3607_v6 }
0x1237   :  { %3391 = vtanh.f32 %v1419_v33 }
0x1238   :  { %3393 = vpow2.f32 %v2779_v45  ;;  %v1590_v25 = vmul.f32 -10000.0, %v1586_v21 }
0x1239   :  { %3395 = vpow2.f32 %v2781_v36 }
0x123a   :  { %v3888_v40 = vrot.slane %v1590_v25, %v3607_v6 }
0x1240   :  { %v3390_v37 = vpop.eup %3389 }
0x1241   :  { %1424 = vrot.lane.b32.xlu0 %v3390_v37, %s3489_s7  ;;  %v3392_v31 = vpop.eup %3391 }
0x1242   :  { %1426 = vrot.lane.b32.xlu1 %v3392_v31, %s3489_s7  ;;  %v3394_v46 = vpop.eup %3393 }
0x1243   :  { %v1379_v47 = vadd.f32 1.0, %v3394_v46  ;;  %v3396_v49 = vpop.eup %3395 }
0x1244   :  { %v1381_v55 = vadd.f32 1.0, %v3396_v49 }
0x1245   :  { %3397 = vrcp.f32 %v1379_v47 }
0x1246   :  { %3399 = vrcp.f32 %v1381_v55 }
0x124f   :  { %v3398_v56 = vpop.eup %3397 }
0x1250   :  { %v3400_v59 = vpop.eup %3399 }
0x12b3   :  { %v1425_v57 = vpop.permute.xlu0 %1424 }
0x12b4   :  { %v1430_v58 = vmul.f32 %v3398_v56, %v1425_v57  ;;  %v1427_v60 = vpop.permute.xlu1 %1426 }
0x12b5   :  { %v1431_v63 = vmul.f32 %v3400_v59, %v1427_v60 }
0x12b6   :  { %1433 = vst.msk [vmem:[#allocation2] sm:$0x80] %vm1432_vm9, %v1430_v58 }
0x12b7   :  { %1434 = vst.msk [vmem:[#allocation2 + $0x8] sm:$0x80] %vm1432_vm9, %v1431_v63 }
0x12bd   :  { %v3838_v50 = vld [vmem:[#allocation2] sm:$0xff] }
0x12be   :  { %2783 = vmatmul.mubr.msk.f32.vlgmr.msra.gmra.mrb[8].mxu1 %vm78_vm0, %v3838_v50  ;;  %v3843_v54 = vld [vmem:[#allocation2 + $0x8] sm:$0xff] }
0x12bf   :  { %1555 = vmatprep.mubr.f32.mxu1 %v3488_v0 }
0x12c2   :  { %2784 = vmatmul.mubr.msk.f32.gmra.mrb[10].mxu1 %vm78_vm0, %v3843_v54 }
0x12c3   :  { %2873 = vmatprep.mubr.msk.f32.mxu1 %vm3490_vm10, %v3488_v0 }
0x1391   :  { %v1551_v62 = vpop.f32.mrb[8].mxu1 }
0x1392   :  { %v1552_v2 = vadd.f32 %v1551_v62, %v1472_v1  ;;  %v1553_v13 = vpop.f32.mrb[9].mxu1 }
0x1393   :  { %v3871_v53 = vadd.f32 %v1553_v13, %v1476_v3 }
0x1394   :  { %1592 = vrot.lane.b32.xlu0 %v1552_v2, %s3489_s7 }
0x1395   :  { %v1557_v22 = vpop.f32.mrb[10].mxu1 }
0x1396   :  { %v3858_v26 = vadd.f32 %v1557_v22, %v1472_v1  ;;  %v1559_v35 = vpop.f32.mrb[11].mxu1 }
0x1397   :  { %v3860_v11 = vadd.f32 %v1559_v35, %v1476_v3 }
0x1398   :  { %1670 = vrot.lane.b32.xlu1 %v3858_v26, %s3489_s7 }
0x1406   :  { %v1593_v39 = vpop.permute.xlu0 %1592 }
0x1407   :  { %2852 = vmatpush3.xpose.msk.msra.mxu0 %vm1594_vm11, %v1593_v39 }
0x1408   :  { %2856 = vmatprep.subr.mxu0 %v3488_v0 }
0x140a   :  { %2854 = vmatmul.mubr.msk.f32.vlgmr.msra.gmra.mrb[12].mxu0 %vm1594_vm11, %v1552_v2  ;;  %v1671_v48 = vpop.permute.xlu1 %1670 }
0x140b   :  { %2858 = vmatprep.mubr.msk.f32.mxu0 %vm3490_vm10, %v3488_v0  ;;  %2857 = vmatpush3.xpose.msk.msra.mxu0 %vm1594_vm11, %v1671_v48 }
0x140c   :  { %2861 = vmatprep.subr.mxu0 %v3488_v0 }
0x140e   :  { %2859 = vmatmul.mubr.msk.f32.vlgmr.msra.gmra.mrb[14].mxu0 %vm1594_vm11, %v3858_v26 }
0x140f   :  { %2862 = vmatpush3.msra.mxu0 %v3871_v53  ;;  %2863 = vmatprep.mubr.msk.f32.mxu0 %vm3490_vm10, %v3488_v0 }
0x1410   :  { %2866 = vmatprep.subr.mxu0 %v3488_v0 }
0x14dd   :  { %v1665_v27 = vpop.f32.mrb[12].mxu0 }
0x14de   :  { %v1746_v33 = vmul.f32 0.17677669, %v1665_v27  ;;  %v2855_v38 = vpop.f32.mrb[13].mxu0 }
0x14e0   :  { %v1760_v41 = vadd.f32 %v3884_v24, %v1746_v33 }
0x14e1   :  { %v1742_v34 = vpop.f32.mrb[14].mxu0 }
0x14e2   :  { %v1763_v23 = vsel %vm1762_vm12, %v1760_v41, -inf  ;;  %v1747_v32 = vmul.f32 0.17677669, %v1742_v34  ;;  %v2860_v29 = vpop.f32.mrb[15].mxu0 }
0x14e3   :  { %1764 = vmax.xlane.f32.xlu0 %v1763_v23 }
0x14e4   :  { %v1761_v43 = vadd.f32 %v3888_v40, %v1747_v32 }
0x14e6   :  { %v1766_v37 = vsel %vm1762_vm12, %v1761_v43, -inf }
0x14e7   :  { %1767 = vmax.xlane.f32.xlu1 %v1766_v37 }
0x14f8   :  { %1933 = vrot.lane.b32.xlu1 %v1552_v2, %s3492_s1 }
0x14fc   :  { %1931 = vrot.lane.b32.xlu1 %v1552_v2, %s3493_s12 }
0x1500   :  { %2009 = vrot.lane.b32.xlu1 %v3858_v26, %s3493_s12 }
0x1570   :  { %v1765_v6 = vpop.xlane.xlu0 %1764 }
0x1571   :  { %v1769_v31 = vsub.f32 %v1760_v41, %v1765_v6 }
0x1573   :  { %v1771_v45 = vmul.f32 1.442695, %v1769_v31 }
0x1574   :  { %v1768_v36 = vpop.xlane.xlu1 %1767 }
0x1575   :  { %3401 = vpow2.f32 %v1771_v45  ;;  %v1770_v46 = vsub.f32 %v1761_v43, %v1768_v36  ;;  %v3167_v45 = vpack.i.bf16 %v3809_v44, %v3807_v10 }
0x1577   :  { %v1773_v47 = vmul.f32 1.442695, %v1770_v46 }
0x1578   :  { %v1934_v49 = vpop.permute.xlu1 %1933 }
0x1579   :  { %3403 = vpow2.f32 %v1773_v47  ;;  %2872 = vmatpush3.xpose.msk.msra.mxu1 %vm1594_vm11, %v1934_v49 }
0x157a   :  { %2881 = vmatprep.subr.mxu1 %v3488_v0 }
0x157c   :  { %v1932_v55 = vpop.permute.xlu1 %1931 }
0x157d   :  { %2874 = vmatmul.mubr.msk.f32.vlgmr.msra.gmra.mrb[12].mxu1 %vm1594_vm11, %v1932_v55 }
0x157e   :  { %2883 = vmatprep.mubr.msk.f32.mxu1 %vm3490_vm10, %v3488_v0 }
0x157f   :  { %v3402_v56 = vpop.eup %3401 }
0x1580   :  { %v1775_v57 = vsel %vm1762_vm12, %v3402_v56, 0.0  ;;  %v2010_v3 = vpop.permute.xlu1 %2009 }
0x1581   :  { %1776 = vadd.xlane.f32.xlu0 %v1775_v57 }
0x1583   :  { %v3404_v58 = vpop.eup %3403 }
0x1584   :  { %v1778_v59 = vsel %vm1762_vm12, %v3404_v58, 0.0 }
0x1585   :  { %1779 = vadd.xlane.f32.xlu0 %v1778_v59 }
0x159b   :  { %2011 = vrot.lane.b32.xlu0 %v3858_v26, %s3492_s1 }
0x160e   :  { %v1777_v60 = vpop.xlane.xlu0 %1776 }
0x160f   :  { %3405 = vrcp.f32 %v1777_v60 }
0x1612   :  { %v1780_v63 = vpop.xlane.xlu0 %1779 }
0x1613   :  { %3407 = vrcp.f32 %v1780_v63 }
0x1616   :  { %v2012_v13 = vpop.permute.xlu0 %2011 }
0x1619   :  { %v3406_v61 = vpop.eup %3405 }
0x161a   :  { %v1783_v1 = vmul.f32 %v3406_v61, %v3402_v56 }
0x161c   :  { %2864 = vmatmul.mubr.msk.f32.vlgmr.msra.gmra.mrb[16].mxu0 %vm1762_vm12, %v1783_v1 }
0x161d   :  { %2867 = vmatpush3.msra.mxu0 %v3860_v11  ;;  %2868 = vmatprep.mubr.msk.f32.mxu0 %vm3490_vm10, %v3488_v0  ;;  %v3408_v62 = vpop.eup %3407 }
0x161e   :  { %2876 = vmatprep.subr.mxu0 %v3488_v0  ;;  %v1784_v2 = vmul.f32 %v3408_v62, %v3404_v58 }
0x1620   :  { %2869 = vmatmul.mubr.msk.f32.vlgmr.msra.gmra.mrb[18].mxu0 %vm1762_vm12, %v1784_v2 }
0x1621   :  { %2878 = vmatprep.mubr.msk.f32.mxu0 %vm3490_vm10, %v3488_v0 }
0x1624   :  { %2877 = vmatpush3.xpose.msk.msra.mxu0 %vm1594_vm11, %v2012_v13 }
0x1625   :  { %2886 = vmatprep.subr.mxu0 %v3488_v0 }
0x1627   :  { %2879 = vmatmul.mubr.msk.f32.vlgmr.msra.gmra.mrb[20].mxu0 %vm1594_vm11, %v2010_v3 }
0x1628   :  { %2888 = vmatprep.mubr.msk.f32.mxu0 %vm3490_vm10, %v3488_v0 }
0x1650   :  { %v2005_v22 = vpop.f32.mrb[12].mxu1 }
0x1651   :  { %v2087_v26 = vmul.f32 0.17677669, %v2005_v22  ;;  %v2875_v35 = vpop.f32.mrb[13].mxu1  ;;  %v1463_v22 = vld [vmem:[%s4012_s3 + $0x2] ss:$0 sm:$0xff] }
0x1653   :  { %v2089_v39 = vadd.f32 %v2087_v26, %v3884_v24 }
0x1655   :  { %v2091_v48 = vsel %vm1762_vm12, %v2089_v39, -inf }
0x1656   :  { %2092 = vmax.xlane.f32.xlu0 %v2091_v48 }
0x16e3   :  { %v2093_v4 = vpop.xlane.xlu0 %2092 }
0x16e4   :  { %v2097_v5 = vsub.f32 %v2089_v39, %v2093_v4 }
0x16e6   :  { %v2099_v9 = vmul.f32 1.442695, %v2097_v5 }
0x16e8   :  { %3409 = vpow2.f32 %v2099_v9 }
0x16ef   :  { %v3921_v12 = vpop.f32.mrb[16].mxu0 }
0x16f0   :  { %v2865_v14 = vpop.f32.mrb[17].mxu0 }
0x16f2   :  { %v3410_v15 = vpop.eup %3409 }
0x16f3   :  { %v3923_v16 = vpop.f32.mrb[18].mxu0  ;;  %v2103_v0 = vsel %vm1762_vm12, %v3410_v15, 0.0 }
0x16f4   :  { %2104 = vadd.xlane.f32.xlu0 %v2103_v0  ;;  %v2870_v17 = vpop.f32.mrb[19].mxu0 }
0x16fa   :  { %v2083_v19 = vpop.f32.mrb[20].mxu0 }
0x16fb   :  { %v2088_v20 = vmul.f32 0.17677669, %v2083_v19  ;;  %v2880_v21 = vpop.f32.mrb[21].mxu0 }
0x16fd   :  { %v2090_v24 = vadd.f32 %v2088_v20, %v3888_v40 }
0x16ff   :  { %v2094_v27 = vsel %vm1762_vm12, %v2090_v24, -inf }
0x1700   :  { %2095 = vmax.xlane.f32.xlu1 %v2094_v27  ;;  %v1454_v27 = vld [vmem:[#allocation3 + $0x68] sm:$0xff] }
0x1711   :  { %2114 = vrot.lane.b32.xlu1 %v3871_v53, %s3493_s12  ;;  %v3177_v53 = vpack.i.bf16 %v3823_v30, %v3821_v28  ;;  %v3182_v28 = vpack.i.bf16 %v3829_v42, %v3827_v18 }
0x1715   :  { %3168 = vrot.lane.b32.xlu1 %v3167_v45, %s3489_s7 }
0x1781   :  { %v2105_v25 = vpop.xlane.xlu0 %2104 }
0x1782   :  { %3411 = vrcp.f32 %v2105_v25  ;;  %v1455_v25 = vld [vmem:[#allocation3 + $0xa0] sm:$0xff] }
0x178c   :  { %v3412_v38 = vpop.eup %3411 }
0x178d   :  { %v2096_v33 = vpop.xlane.xlu1 %2095  ;;  %v2111_v23 = vmul.f32 %v3412_v38, %v3410_v15  ;;  %v1456_v38 = vld [vmem:[#allocation3 + $0xd8] sm:$0xff] }
0x178e   :  { %v2098_v41 = vsub.f32 %v2090_v24, %v2096_v33  ;;  %v1453_v24 = vld [vmem:[#allocation3 + $0x30] sm:$0xff] }
0x178f   :  { %v3124_v33 = vpack.c.bf16 %v1454_v27, %v1453_v24 }
0x1790   :  { %v2101_v34 = vmul.f32 1.442695, %v2098_v41  ;;  %v3128_v41 = vpack.c.bf16 %v1456_v38, %v1455_v25 }
0x1791   :  { %v2115_v32 = vpop.permute.xlu1 %2114 }
0x1792   :  { %3413 = vpow2.f32 %v2101_v34  ;;  %2882 = vmatpush3.msra.mxu1 %v2115_v32  ;;  %v1464_v34 = vld [vmem:[%s4012_s3 + $0xa] ss:$0 sm:$0xff]  ;;  %v1458_v32 = vld [vmem:[#allocation3 + $0x148] sm:$0xff] }
0x1793   :  { %2884 = vmatmul.mubr.msk.f32.vlgmr.msra.gmra.mrb[14].mxu1 %vm1762_vm12, %v2111_v23  ;;  %v1457_v23 = vld [vmem:[#allocation3 + $0x110] sm:$0xff] }
0x1795   :  { %v3169_v46 = vpop.permute.xlu1 %3168 }
0x1796   :  { %v3171_v47 = vunpack.i.h.bf16 %v3169_v46  ;;  %v3170_v49 = vunpack.i.l.bf16 %v3169_v46 }
0x1798   :  { %v3108_v56 = vpack.c.bf16 %v3171_v47, %v3170_v49 }
0x179a   :  { %3109 = vmatprep.subr.bf16.mxu1 %v3108_v56 }
0x179b   :  { %3111 = vmatpush3.bf16.msra.mxu1 %v3108_v56 }
0x179c   :  { %v3414_v29 = vpop.eup %3413 }
0x179d   :  { %v2106_v40 = vsel %vm1762_vm12, %v3414_v29, 0.0 }
0x179e   :  { %2107 = vadd.xlane.f32.xlu0 %v2106_v40  ;;  %v1459_v40 = vld [vmem:[#allocation3 + $0x180] sm:$0xff] }
0x17b4   :  { %2191 = vrot.lane.b32.xlu0 %v3860_v11, %s3493_s12  ;;  %v3172_v11 = vpack.i.bf16 %v3815_v8, %v3813_v7 }
0x17b6   :  { %3173 = vrot.lane.b32.xlu1 %v3172_v11, %s3489_s7 }
0x17b8   :  { %3178 = vrot.lane.b32.xlu0 %v3177_v53, %s3489_s7  ;;  %v1460_v53 = vld [vmem:[#allocation3 + $0x1b8] sm:$0xff] }
0x17b9   :  { %v3202_v45 = vpack.i.bf16 %v1460_v53, %v1459_v40 }
0x17ba   :  { %3183 = vrot.lane.b32.xlu1 %v3182_v28, %s3489_s7 }
0x1828   :  { %v3174_v57 = vpop.permute.xlu1 %3173 }
0x1829   :  { %v3176_v7 = vunpack.i.h.bf16 %v3174_v57  ;;  %v3175_v8 = vunpack.i.l.bf16 %v3174_v57 }
0x182b   :  { %v2108_v43 = vpop.xlane.xlu0 %2107  ;;  %v3112_v18 = vpack.c.bf16 %v3176_v7, %v3175_v8 }
0x182c   :  { %3415 = vrcp.f32 %v2108_v43  ;;  %v3184_v42 = vpop.permute.xlu1 %3183  ;;  %v3136_v43 = vpack.c.bf16 %v1460_v53, %v1459_v40 }
0x182d   :  { %3113 = vmatprep.subr.bf16.mxu1 %v3112_v18  ;;  %v3186_v59 = vunpack.i.h.bf16 %v3184_v42  ;;  %v3185_v60 = vunpack.i.l.bf16 %v3184_v42 }
0x182e   :  { %3115 = vmatpush3.bf16.msra.mxu1 %v3112_v18 }
0x182f   :  { %v2192_v37 = vpop.permute.xlu0 %2191  ;;  %v3120_v1 = vpack.c.bf16 %v3186_v59, %v3185_v60 }
0x1830   :  { %2887 = vmatpush3.msra.mxu0 %v2192_v37  ;;  %v3187_v37 = vpack.i.bf16 %v1454_v27, %v1453_v24 }
0x1831   :  { %3125 = vmatprep.subr.bf16.mxu0 %v3124_v33 }
0x1833   :  { %v3179_v10 = vpop.permute.xlu0 %3178 }
0x1834   :  { %v3181_v44 = vunpack.i.h.bf16 %v3179_v10  ;;  %v3180_v55 = vunpack.i.l.bf16 %v3179_v10 }
0x1836   :  { %v3416_v6 = vpop.eup %3415  ;;  %v3116_v58 = vpack.c.bf16 %v3181_v44, %v3180_v55 }
0x1837   :  { %v2112_v31 = vmul.f32 %v3416_v6, %v3414_v29  ;;  %v3132_v29 = vpack.c.bf16 %v1458_v32, %v1457_v23  ;;  %v3197_v6 = vpack.i.bf16 %v1458_v32, %v1457_v23 }
0x1838   :  { %3117 = vmatprep.subr.bf16.mxu1 %v3116_v58 }
0x1839   :  { %2889 = vmatmul.mubr.msk.f32.vlgmr.msra.gmra.mrb[22].mxu0 %vm1762_vm12, %v2112_v31  ;;  %3119 = vmatpush3.bf16.msra.mxu1 %v3116_v58  ;;  %v3192_v31 = vpack.i.bf16 %v1456_v38, %v1455_v25 }
0x183a   :  { %3121 = vmatprep.subr.bf16.mxu1 %v3120_v1  ;;  %3127 = vmatpush3.bf16.msra.mxu0 %v3124_v33 }
0x183b   :  { %3129 = vmatprep.subr.bf16.mxu0 %v3128_v41 }
0x183d   :  { %3123 = vmatpush3.bf16.msra.mxu1 %v3120_v1 }
0x183e   :  { %3131 = vmatpush3.bf16.msra.mxu0 %v3128_v41 }
0x183f   :  { %3133 = vmatprep.subr.bf16.mxu0 %v3132_v29 }
0x1842   :  { %3135 = vmatpush3.bf16.msra.mxu0 %v3132_v29  ;;  %v1465_v29 = vld [vmem:[%s4012_s3 + $0x3] ss:$0 sm:$0xff] }
0x1843   :  { %3137 = vmatprep.subr.bf16.mxu0 %v3136_v43 }
0x1846   :  { %3139 = vmatpush3.bf16.msra.mxu0 %v3136_v43 }
0x1866   :  { %v2186_v30 = vpop.f32.mrb[14].mxu1 }
0x1867   :  { %2269 = vrot.lane.b32.xlu0 %v2186_v30, %s3492_s1  ;;  %v2885_v36 = vpop.f32.mrb[15].mxu1 }
0x18d9   :  { %v2270_v63 = vpop.permute.xlu0 %2269 }
0x18da   :  { %v2275_v61 = vsel %vm1594_vm11, %v3921_v12, %v2270_v63 }
0x18db   :  { %2907 = vmatprep.mubr.msk.f32.mxu1 %vm78_vm0, %v2275_v61 }
0x190c   :  { %v2263_v62 = vpop.f32.mrb[22].mxu0 }
0x190d   :  { %2271 = vrot.lane.b32.xlu1 %v2263_v62, %s3492_s1  ;;  %v2890_v2 = vpop.f32.mrb[23].mxu0 }
0x197f   :  { %v2272_v13 = vpop.permute.xlu1 %2271 }
0x1980   :  { %v2276_v3 = vsel %vm1594_vm11, %v3923_v16, %v2272_v13 }
0x1981   :  { %2908 = vmatmul.mubr.msk.f32.vlgmr.msra.gmra.mrb[16].mxu1 %vm78_vm0, %v2276_v3 }
0x1a54   :  { %v2909_v26 = vpop.f32.mrb[16].mxu1 }
0x1a55   :  { %v2387_v35 = vadd.f32 %v2909_v26, %v1463_v22  ;;  %v2381_v39 = vpop.f32.mrb[17].mxu1 }
0x1a56   :  { %v2382_v48 = vadd.f32 %v2381_v39, %v1463_v22 }
0x1a57   :  { %v2391_v4 = vadd.f32 %v2387_v35, %v3843_v54 }
0x1a58   :  { %v2390_v5 = vadd.f32 %v2382_v48, %v3838_v50 }
0x1a59   :  { %v2395_v9 = vsel %vm78_vm0, %v2391_v4, 0.0 }
0x1a5a   :  { %2396 = vadd.xlane.f32.xlu1 %v2395_v9  ;;  %v2392_v12 = vsel %vm78_vm0, %v2390_v5, 0.0 }
0x1a5b   :  { %2393 = vadd.xlane.f32.xlu0 %v2392_v12 }
0x1a6b   :  { %2420 = vrot.lane.b32.xlu1 %v1463_v22, %s3489_s7 }
0x1a6f   :  { %3188 = vrot.lane.b32.xlu1 %v3187_v37, %s3489_s7 }
0x1a73   :  { %3193 = vrot.lane.b32.xlu1 %v3192_v31, %s3489_s7 }
0x1a77   :  { %3203 = vrot.lane.b32.xlu1 %v3202_v45, %s3489_s7 }
0x1ae7   :  { %v2397_v14 = vpop.xlane.xlu1 %2396 }
0x1ae8   :  { %v2400_v15 = vmul.f32 0.015625, %v2397_v14  ;;  %v2394_v16 = vpop.xlane.xlu0 %2393 }
0x1ae9   :  { %v2399_v0 = vmul.f32 0.015625, %v2394_v16 }
0x1aea   :  { %v2402_v17 = vsub.f32 %v2391_v4, %v2400_v15 }
0x1aeb   :  { %v2401_v19 = vsub.f32 %v2390_v5, %v2399_v0  ;;  %v2421_v10 = vpop.permute.xlu1 %2420 }
0x1aec   :  { %v2404_v54 = vmul.f32 %v2402_v17, %v2402_v17 }
0x1aed   :  { %v2403_v20 = vmul.f32 %v2401_v19, %v2401_v19 }
0x1aee   :  { %v2408_v50 = vsel %vm78_vm0, %v2404_v54, 0.0 }
0x1aef   :  { %v2405_v21 = vsel %vm78_vm0, %v2403_v20, 0.0  ;;  %v3189_v42 = vpop.permute.xlu1 %3188 }
0x1af0   :  { %2406 = vadd.xlane.f32.xlu0 %v2405_v21  ;;  %v3191_v59 = vunpack.i.h.bf16 %v3189_v42  ;;  %v3190_v60 = vunpack.i.l.bf16 %v3189_v42 }
0x1af2   :  { %v3140_v61 = vpack.c.bf16 %v3191_v59, %v3190_v60 }
0x1af3   :  { %v3194_v2 = vpop.permute.xlu1 %3193 }
0x1af4   :  { %2409 = vadd.xlane.f32.xlu0 %v2408_v50  ;;  %v3196_v13 = vunpack.i.h.bf16 %v3194_v2  ;;  %v3195_v3 = vunpack.i.l.bf16 %v3194_v2  ;;  %3141 = vmatprep.subr.bf16.mxu1 %v3140_v61 }
0x1af5   :  { %3143 = vmatpush3.bf16.msra.mxu1 %v3140_v61 }
0x1af6   :  { %v3144_v22 = vpack.c.bf16 %v3196_v13, %v3195_v3 }
0x1af7   :  { %v3204_v35 = vpop.permute.xlu1 %3203 }
0x1af8   :  { %3145 = vmatprep.subr.bf16.mxu1 %v3144_v22  ;;  %v3206_v39 = vunpack.i.h.bf16 %v3204_v35  ;;  %v3205_v48 = vunpack.i.l.bf16 %v3204_v35 }
0x1af9   :  { %3147 = vmatpush3.bf16.msra.mxu1 %v3144_v22 }
0x1afa   :  { %v3152_v4 = vpack.c.bf16 %v3206_v39, %v3205_v48 }
0x1b0a   :  { %2428 = vrot.lane.b32.xlu0 %v1464_v34, %s3489_s7 }
0x1b0e   :  { %3198 = vrot.lane.b32.xlu0 %v3197_v6, %s3489_s7 }
0x1b7d   :  { %v2407_v11 = vpop.xlane.xlu0 %2406 }
0x1b7e   :  { %v2411_v28 = vmul.f32 0.015625, %v2407_v11 }
0x1b80   :  { %v2413_v30 = vadd.f32 1e-12, %v2411_v28 }
0x1b81   :  { %v2410_v36 = vpop.xlane.xlu0 %2409 }
0x1b82   :  { %3417 = vrsqrt.f32 %v2413_v30  ;;  %v2412_v46 = vmul.f32 0.015625, %v2410_v36 }
0x1b84   :  { %v2414_v47 = vadd.f32 1e-12, %v2412_v46 }
0x1b85   :  { %v2429_v18 = vpop.permute.xlu0 %2428 }
0x1b86   :  { %3419 = vrsqrt.f32 %v2414_v47 }
0x1b89   :  { %v3199_v63 = vpop.permute.xlu0 %3198 }
0x1b8a   :  { %v3201_v1 = vunpack.i.h.bf16 %v3199_v63  ;;  %v3200_v62 = vunpack.i.l.bf16 %v3199_v63 }
0x1b8c   :  { %v3418_v49 = vpop.eup %3417  ;;  %v3148_v26 = vpack.c.bf16 %v3201_v1, %v3200_v62 }
0x1b8d   :  { %v2417_v44 = vmul.f32 %v3418_v49, %v2401_v19 }
0x1b8e   :  { %3149 = vmatprep.subr.bf16.mxu1 %v3148_v26 }
0x1b8f   :  { %v2423_v55 = vmul.f32 %v2421_v10, %v2417_v44  ;;  %3151 = vmatpush3.bf16.msra.mxu1 %v3148_v26 }
0x1b90   :  { %v3420_v56 = vpop.eup %3419  ;;  %3153 = vmatprep.subr.bf16.mxu1 %v3152_v4 }
0x1b91   :  { %v2418_v57 = vmul.f32 %v3420_v56, %v2402_v17  ;;  %v2425_v7 = vadd.f32 %v2423_v55, %v1464_v34 }
0x1b93   :  { %v2424_v8 = vmul.f32 %v2421_v10, %v2418_v57  ;;  %2926 = vmatprep.mubr.msk.f32.mxu0 %vm78_vm0, %v2425_v7  ;;  %3155 = vmatpush3.bf16.msra.mxu1 %v3152_v4  ;;  %v1466_v57 = vld [vmem:[%s4012_s3 + $0xb] ss:$0 sm:$0xff] }
0x1b95   :  { %v2426_v58 = vadd.f32 %v2424_v8, %v1464_v34 }
0x1b97   :  { %2927 = vmatmul.mubr.msk.f32.vlgmr.msra.gmra.mrb[24].mxu0 %vm78_vm0, %v2426_v58 }
0x1c6a   :  { %v2928_v5 = vpop.f32.mrb[24].mxu0 }
0x1c6b   :  { %v2509_v9 = vadd.f32 %v2928_v5, %v2429_v18  ;;  %v2503_v12 = vpop.f32.mrb[25].mxu0 }
0x1c6c   :  { %v2504_v14 = vadd.f32 %v2503_v12, %v2429_v18 }
0x1c6d   :  { %v2515_v15 = vmul.f32 0.044715, %v2509_v9  ;;  %v2513_v34 = vmul.f32 0.5, %v2509_v9 }
0x1c6e   :  { %v2514_v16 = vmul.f32 0.044715, %v2504_v14  ;;  %v2512_v38 = vmul.f32 0.5, %v2504_v14 }
0x1c6f   :  { %v2517_v0 = vmul.f32 %v2515_v15, %v2509_v9 }
0x1c70   :  { %v2516_v17 = vmul.f32 %v2514_v16, %v2504_v14 }
0x1c71   :  { %v2519_v19 = vmul.f32 %v2517_v0, %v2509_v9 }
0x1c72   :  { %v2518_v20 = vmul.f32 %v2516_v17, %v2504_v14 }
0x1c73   :  { %v2521_v21 = vadd.f32 %v2519_v19, %v2509_v9  ;;  %v1467_v9 = vld [vmem:[%s4012_s3 + $0x4] ss:$0 sm:$0xff]  ;;  %s3495_s3 = smov [#allocation6]  }
0x1c74   :  { %v2520_v54 = vadd.f32 %v2518_v20, %v2504_v14  ;;  %s2732_s23 = sshll.u32 %s3495_s3, 4  ;;  %s2733_s23 = int_to_ptr.vmem [resolvable:$true] %s2732_s23 }
0x1c75   :  { %v2523_v50 = vmul.f32 0.7978846, %v2521_v21  ;;  %s3459_s24 = scalar_lea.vmem %s2733_s23, 32  ;;  %p3464_p9 = scmp.lt.s32.totalorder %s2733_s23, %s2733_s23 }
0x1c76   :  { %v2522_v24 = vmul.f32 0.7978846, %v2520_v54  ;;  %p3460_p8 = scmp.ne.s32.totalorder %s2733_s23, %s3459_s24  ;;  %p3465_p10 = scmp.lt.s32.totalorder %s3459_s24, %s3459_s24 }
0x1c77   :  { %3421 = vtanh.f32 %v2523_v50 }
0x1c78   :  { %3423 = vtanh.f32 %v2522_v24  ;;  %v2713_v24 = vand.u32 127, %v68_v51  ;;  %p3466_p11 = por %p3465_p10, %p3464_p9 }
0x1c7a   :  { %p3467_p12 = pnand %p3466_p11, %p3460_p8 }
0x1c81   :  { %v3422_v27 = vpop.eup %3421 }
0x1c82   :  { %v3424_v25 = vpop.eup %3423  ;;  %v2527_v33 = vadd.f32 1.0, %v3422_v27  ;;  %v2716_v27 = vsub.s32 %v2713_v24, %v3590_v52 }
0x1c83   :  { %v2526_v41 = vadd.f32 1.0, %v3424_v25 }
0x1c84   :  { %v2529_v32 = vmul.f32 %v2527_v33, %v2513_v34 }
0x1c85   :  { %v2528_v23 = vmul.f32 %v2526_v41, %v2512_v38 }
0x1c87   :  { %2945 = vmatprep.mubr.msk.f32.mxu1 %vm78_vm0, %v2528_v23 }
0x1c88   :  { %2946 = vmatmul.mubr.msk.f32.vlgmr.msra.gmra.mrb[18].mxu1 %vm78_vm0, %v2529_v32 }
0x1d5b   :  { %v2947_v40 = vpop.f32.mrb[18].mxu1 }
0x1d5c   :  { %v2640_v53 = vadd.f32 %v2947_v40, %v1465_v29  ;;  %v2634_v43 = vpop.f32.mrb[19].mxu1 }
0x1d5d   :  { %v2635_v37 = vadd.f32 %v2634_v43, %v1465_v29 }
0x1d5e   :  { %v2644_v6 = vadd.f32 %v2640_v53, %v2426_v58 }
0x1d5f   :  { %v2643_v31 = vadd.f32 %v2635_v37, %v2425_v7  ;;  %v3494_v7 = vmov 0  }
0x1d60   :  { %v2648_v45 = vsel %vm78_vm0, %v2644_v6, 0.0  ;;  %3207 = vset.pattern.permute.xlu1 %v3494_v7  ;;  %3208 = vset.pattern.permute.xlu0 %v3494_v7 }
0x1d61   :  { %2649 = vadd.xlane.f32.xlu1 %v2648_v45  ;;  %v2645_v11 = vsel %vm78_vm0, %v2643_v31, 0.0 }
0x1d62   :  { %2646 = vadd.xlane.f32.xlu0 %v2645_v11 }
0x1d72   :  { %2672 = vrot.lane.b32.xlu1 %v1465_v29, %s3489_s7 }
0x1dee   :  { %v2650_v28 = vpop.xlane.xlu1 %2649 }
0x1def   :  { %v2652_v30 = vmul.f32 0.015625, %v2650_v28  ;;  %v2647_v36 = vpop.xlane.xlu0 %2646 }
0x1df0   :  { %v2651_v46 = vmul.f32 0.015625, %v2647_v36 }
0x1df1   :  { %v2654_v47 = vsub.f32 %v2644_v6, %v2652_v30 }
0x1df2   :  { %v2653_v49 = vsub.f32 %v2643_v31, %v2651_v46  ;;  %v2673_v61 = vpop.permute.xlu1 %2672 }
0x1df3   :  { %v2656_v55 = vmul.f32 %v2654_v47, %v2654_v47 }
0x1df4   :  { %v2655_v10 = vmul.f32 %v2653_v49, %v2653_v49 }
0x1df5   :  { %v2660_v56 = vsel %vm78_vm0, %v2656_v55, 0.0 }
0x1df6   :  { %v2657_v44 = vsel %vm78_vm0, %v2655_v10, 0.0 }
0x1df7   :  { %2658 = vadd.xlane.f32.xlu0 %v2657_v44 }
0x1dfb   :  { %2661 = vadd.xlane.f32.xlu0 %v2660_v56 }
0x1e11   :  { %2680 = vrot.lane.b32.xlu0 %v1466_v57, %s3489_s7 }
0x1e84   :  { %v2659_v8 = vpop.xlane.xlu0 %2658 }
0x1e85   :  { %v2663_v58 = vmul.f32 0.015625, %v2659_v8 }
0x1e87   :  { %v2665_v18 = vadd.f32 1e-12, %v2663_v58 }
0x1e88   :  { %v2662_v42 = vpop.xlane.xlu0 %2661 }
0x1e89   :  { %3425 = vrsqrt.f32 %v2665_v18  ;;  %v2664_v59 = vmul.f32 0.015625, %v2662_v42 }
0x1e8b   :  { %v2666_v60 = vadd.f32 1e-12, %v2664_v59 }
0x1e8c   :  { %v2681_v13 = vpop.permute.xlu0 %2680 }
0x1e8d   :  { %3427 = vrsqrt.f32 %v2666_v60 }
0x1e93   :  { %v3426_v63 = vpop.eup %3425 }
0x1e94   :  { %v2669_v1 = vmul.f32 %v3426_v63, %v2653_v49 }
0x1e96   :  { %v2675_v62 = vmul.f32 %v2673_v61, %v2669_v1 }
0x1e97   :  { %v3428_v2 = vpop.eup %3427 }
0x1e98   :  { %v2670_v3 = vmul.f32 %v3428_v2, %v2654_v47  ;;  %v2677_v22 = vadd.f32 %v2675_v62, %v1466_v57 }
0x1e9a   :  { %v2676_v26 = vmul.f32 %v2673_v61, %v2670_v3  ;;  %v2683_v35 = vmul.f32 %v2681_v13, %v2677_v22 }
0x1e9c   :  { %v2678_v39 = vadd.f32 %v2676_v26, %v1466_v57  ;;  %v2685_v48 = vsel %vm78_vm0, %v2683_v35, 0.0 }
0x1e9d   :  { %2686 = vadd.xlane.f32.xlu1 %v2685_v48 }
0x1e9e   :  { %v2684_v4 = vmul.f32 %v2681_v13, %v2678_v39 }
0x1ea0   :  { %v2688_v5 = vsel %vm78_vm0, %v2684_v4, 0.0 }
0x1ea1   :  { %2689 = vadd.xlane.f32.xlu0 %v2688_v5 }
0x1eae   :  { %2693 = vperm.xlu1 %3207, %v1467_v9  }
0x1f2a   :  { %v2687_v12 = vpop.xlane.xlu1 %2686 }
0x1f2e   :  { %v2690_v14 = vpop.xlane.xlu0 %2689  ;;  %v2694_v15 = vpop.permute.xlu1 %2693 }
0x1f2f   :  { %v2696_v16 = vadd.f32 %v2694_v15, %v2687_v12  ;;  %v2697_v0 = vadd.f32 %v2694_v15, %v2690_v14 }
0x1f31   :  { %v2803_v17 = vmul.f32 -1.442695, %v2696_v16  ;;  %v2804_v19 = vmul.f32 -1.442695, %v2697_v0 }
0x1f33   :  { %3429 = vpow2.f32 %v2803_v17 }
0x1f34   :  { %3431 = vpow2.f32 %v2804_v19 }
0x1f3d   :  { %v3430_v20 = vpop.eup %3429 }
0x1f3e   :  { %v3432_v21 = vpop.eup %3431  ;;  %v2704_v54 = vadd.f32 1.0, %v3430_v20 }
0x1f3f   :  { %v2705_v50 = vadd.f32 1.0, %v3432_v21 }
0x1f40   :  { %3433 = vrcp.f32 %v2704_v54 }
0x1f41   :  { %3435 = vrcp.f32 %v2705_v50 }
0x1f4a   :  { %v3434_v25 = vpop.eup %3433 }
0x1f4b   :  { %v3436_v33 = vpop.eup %3435  ;;  %v2717_v38 = vrot.slane %v3434_v25, %v2716_v27 }
0x1f4c   :  { %v2721_v41 = vrot.slane %v3436_v33, %v2716_v27 }
0x1f4e   :  { %v2722_v34 = vsel %vm314_vm2, %v2721_v41, %v2717_v38 }
0x1f4f   :  { %2725 = vst.msk [vmem:[#allocation6] sm:$0x3] %vm2724_vm13, %v2722_v34 }
0x1f50   :  { %3470 = shalt.err (!%p3467_p12)
}
0x1f51   :  { %s3471_s27 = scalar_lea.hbm %s4013_s4, 32 }
0x1f52   :  { %p3472_p13 = scmp.ne.s32.totalorder %s4013_s4, %s3471_s27  ;;  %p3475_p0 = scmp.lt.u32.totalorder %s3471_s27, %s4013_s4 }
0x1f54   :  { %p3477_p1 = pnand %p3475_p0, %p3472_p13 }
0x1f56   :  { %3480 = shalt.err (!%p3477_p1)
}
0x1f57   :  { %2735 = dma.vmem_to_hbm [thread:$0]  %s2733_s23, 32, %s4013_s4, [#allocation5]  }
0x1f58   :  { %3483 = dma.done.wait [#allocation5], 32  }
0x1f59   :  { %3484 = vsyncadd [#allocation5], 4294967264 }
0x1f5a   :  { %2739 = vsyncpa [#allocation4], 1 }
0x1f5b   :  { %2740 = vsyncpa [#allocation5], 1 }

</bundles_post_ra>
